<compile_context>
chip_gen: v6e
topology: v6e:2x2x1
jax: 0.10.0
libtpu: 0.0.40
codegen_flags: <defaults>
</compile_context>

<pallas_src>
import math
import jax
import jax.numpy as jnp
from jax import lax
from jax.experimental import pallas as pl
from jax.experimental.pallas import tpu as pltpu


# -----------------------------------------------------------------------------
# Packed-slab layout (shared by prepare_params and the kernel)
# -----------------------------------------------------------------------------
def _slab_offsets(D, H):
    """Row offsets of each parameter inside the packed (rows, 4H) slab.

    All multi-row blocks start at multiples of 8 (sublane-aligned) for the
    given D=8, H=32 configuration.
    """
    off = {}
    r = 0
    off["wih0"] = r; r += D          # (D, 4H)   layer-0 input weights (pre-T)
    off["whh0"] = r; r += H          # (H, 4H)   layer-0 recurrent weights
    off["w1"]   = r; r += 2 * H      # (2H, 4H)  [W_ih1.T ; W_hh1.T] stacked
    off["wr1"]  = r; r += H          # (H, H)    regressor L1 (lane-padded)
    off["wr2"]  = r; r += H          # (H, H//2) regressor L2 (lane-padded)
    off["wr3"]  = r; r += H // 2     # (H//2, 1) regressor L3 (lane-padded)
    off["bias"] = r; r += 8          # rows: b0, b1, br1, br2, br3, 3x pad
    off["rows"] = r                  # total rows (192 for D=8, H=32)
    return off


# -----------------------------------------------------------------------------
# Pallas kernel factory: fused 2-layer LSTM recurrence + 3-layer MLP regressor
# -----------------------------------------------------------------------------
def _make_lstm_rul_kernel(T, Bp, D, H):
    off = _slab_offsets(D, H)
    W = 4 * H  # lane width of the slab / gate vectors (128 for H=32)

    def kernel(xf_ref,    # (T*Bp, D)  time-major, batch-padded, flattened
               slab_ref,  # (rows, 4H) packed weights/biases
               out_ref):  # (Bp, 4H)   lanes [0:H]=features, lane [H]=pred

        # ---- unpack the packed slab with static row offsets -----------------
        b = off["bias"]
        wih0 = slab_ref[off["wih0"]:off["wih0"] + D, :]            # (D, 4H)
        whh0 = slab_ref[off["whh0"]:off["whh0"] + H, :]            # (H, 4H)
        w1   = slab_ref[off["w1"]:off["w1"] + 2 * H, :]            # (2H, 4H)
        wr1  = slab_ref[off["wr1"]:off["wr1"] + H, 0:H]            # (H, H)
        wr2  = slab_ref[off["wr2"]:off["wr2"] + H, 0:H // 2]       # (H, H//2)
        wr3  = slab_ref[off["wr3"]:off["wr3"] + H // 2, 0:1]       # (H//2, 1)
        b0   = slab_ref[b + 0:b + 1, :]                            # (1, 4H)
        b1   = slab_ref[b + 1:b + 2, :]                            # (1, 4H)
        br1  = slab_ref[b + 2:b + 3, 0:H]                          # (1, H)
        br2  = slab_ref[b + 3:b + 4, 0:H // 2]                     # (1, H//2)
        br3  = slab_ref[b + 4:b + 5, 0:1]                          # (1, 1)

        # ---- hoisted layer-0 input projection (time-parallel) ---------------
        xproj = (jnp.dot(xf_ref[...], wih0,
                         preferred_element_type=jnp.float32)
                 + b0)                                             # (T*Bp, 4H)

        def gates_to_hc(gates, c):
            # Full-vreg transcendentals on the whole (Bp, 4H) tile (2 EUP
            # passes), then slice the H-lane i/f/g/o chunks.
            sig = jax.nn.sigmoid(gates)
            th = jnp.tanh(gates)
            i_g = sig[:, 0 * H:1 * H]
            f_g = sig[:, 1 * H:2 * H]
            g_g = th[:, 2 * H:3 * H]
            o_g = sig[:, 3 * H:4 * H]
            c_new = f_g * c + i_g * g_g
            h_new = o_g * jnp.tanh(c_new)
            return h_new, c_new

        zeros = jnp.zeros((Bp, H), jnp.float32)
        h0, c0, h1, c1 = zeros, zeros, zeros, zeros

        # ---- fused 2-layer recurrence, fully unrolled (T static & tiny) -----
        # PyTorch semantics preserved: layer-1 at step t consumes layer-0's
        # output at step t (inter-layer dropout is identity in eval mode).
        for t in range(T):
            # layer 0: sublane-aligned (Bp=8) xproj slice + 1 recurrent dot
            g0 = (xproj[t * Bp:(t + 1) * Bp, :]
                  + jnp.dot(h0, whh0, preferred_element_type=jnp.float32))
            h0, c0 = gates_to_hc(g0, c0)
            # layer 1: single stacked dot, [h0 | h1] @ [W_ih1; W_hh1]
            g1 = (jnp.dot(jnp.concatenate([h0, h1], axis=-1), w1,
                          preferred_element_type=jnp.float32)
                  + b1)
            h1, c1 = gates_to_hc(g1, c1)

        # features = encoder_outputs[:, -1:].squeeze() -> last top-layer h
        features = h1                                              # (Bp, H)

        # regressor: Linear -> ReLU -> (Dropout=id) -> Linear -> ReLU -> Linear
        m1 = jnp.maximum(
            jnp.dot(features, wr1, preferred_element_type=jnp.float32) + br1,
            0.0)
        m2 = jnp.maximum(
            jnp.dot(m1, wr2, preferred_element_type=jnp.float32) + br2, 0.0)
        pred = jnp.dot(m2, wr3, preferred_element_type=jnp.float32) + br3

        # single lane-dense 128-lane store: [features | pred | zero pad]
        out_ref[...] = jnp.concatenate(
            [features, pred, jnp.zeros((Bp, W - H - 1), jnp.float32)], axis=-1)

    return kernel


# -----------------------------------------------------------------------------
# One-time parameter preparation (outside the per-call forward)
# -----------------------------------------------------------------------------
def init_params(key, input_dim, hidden_dim):
    """Deterministic init mimicking PyTorch defaults (uniform(-k, k))."""
    H = hidden_dim
    ks = jax.random.split(key, 16)
    u = lambda k, shape, bound: jax.random.uniform(
        k, shape, jnp.float32, -bound, bound)

    klstm = 1.0 / math.sqrt(H)
    return {
        # LSTM layer 0 (PyTorch layout: W_ih (4H, D), W_hh (4H, H))
        "w_ih0": u(ks[0], (4 * H, input_dim), klstm),
        "w_hh0": u(ks[1], (4 * H, H), klstm),
        "b_ih0": u(ks[2], (4 * H,), klstm),
        "b_hh0": u(ks[3], (4 * H,), klstm),
        # LSTM layer 1
        "w_ih1": u(ks[4], (4 * H, H), klstm),
        "w_hh1": u(ks[5], (4 * H, H), klstm),
        "b_ih1": u(ks[6], (4 * H,), klstm),
        "b_hh1": u(ks[7], (4 * H,), klstm),
        # Regressor (PyTorch layout: W (out, in))
        "wr1": u(ks[8], (H, H), 1.0 / math.sqrt(H)),
        "br1": u(ks[9], (H,), 1.0 / math.sqrt(H)),
        "wr2": u(ks[10], (H // 2, H), 1.0 / math.sqrt(H)),
        "br2": u(ks[11], (H // 2,), 1.0 / math.sqrt(H)),
        "wr3": u(ks[12], (1, H // 2), 1.0 / math.sqrt(H // 2)),
        "br3": u(ks[13], (1,), 1.0 / math.sqrt(H // 2)),
    }


def prepare_params(params):
    """Pack all weights/biases into one kernel-ready (rows, 4H) f32 slab.

    Runs ONCE; the jitted forward then takes (x, slab) and is essentially a
    single pallas_call (no per-call transposes / bias sums / reshapes).
    """
    H = params["w_hh0"].shape[1]
    D = params["w_ih0"].shape[1]
    W = 4 * H
    off = _slab_offsets(D, H)

    def lane_pad(a):  # pad last dim to the slab lane width W
        return jnp.pad(a, ((0, 0), (0, W - a.shape[-1])))

    wih0 = params["w_ih0"].T                                       # (D, 4H)
    whh0 = params["w_hh0"].T                                       # (H, 4H)
    w1 = jnp.concatenate([params["w_ih1"].T, params["w_hh1"].T],
                         axis=0)                                   # (2H, 4H)
    wr1 = lane_pad(params["wr1"].T)                                # (H, W)
    wr2 = lane_pad(params["wr2"].T)                                # (H, W)
    wr3 = lane_pad(params["wr3"].T)                                # (H//2, W)
    b0 = (params["b_ih0"] + params["b_hh0"]).reshape(1, W)
    b1 = (params["b_ih1"] + params["b_hh1"]).reshape(1, W)
    br1 = lane_pad(params["br1"].reshape(1, H))
    br2 = lane_pad(params["br2"].reshape(1, H // 2))
    br3 = lane_pad(params["br3"].reshape(1, 1))
    bias_blk = jnp.concatenate(
        [b0, b1, br1, br2, br3, jnp.zeros((3, W), jnp.float32)], axis=0)

    slab = jnp.concatenate([wih0, whh0, w1, wr1, wr2, wr3, bias_blk],
                           axis=0).astype(jnp.float32)
    assert slab.shape == (off["rows"], W)
    return slab


# -----------------------------------------------------------------------------
# Forward wrapper: layout plumbing + single pallas_call
# -----------------------------------------------------------------------------
def lstm_rul_forward(x_btd, slab):
    """x_btd: (B, T, D) float32, batch_first like the PyTorch module."""
    B, T, D = x_btd.shape
    H = slab.shape[1] // 4

    # Pad batch to the 8-sublane granularity so every per-step xproj slice is
    # a full aligned (8, 128) vreg; padded rows are discarded after the call.
    Bp = ((B + 7) // 8) * 8
    if Bp != B:
        x_btd = jnp.pad(x_btd, ((0, Bp - B), (0, 0), (0, 0)))

    # Time-major, flattened over (T, Bp) so the kernel can do one hoisted
    # (T*Bp, D) @ (D, 4H) input-projection matmul.
    x_flat = (jnp.transpose(x_btd, (1, 0, 2))
              .reshape(T * Bp, D).astype(jnp.float32))

    # Whole problem (x + packed slab + state) is ~200 KB: no grid, no tiling,
    # everything VMEM-resident; exactly 2 input DMAs and 1 lane-dense output.
    # NOTE(v7x): for large production batches, add a batch-tile grid axis with
    # dimension_semantics=("parallel",) to use both TensorCores, and size the
    # per-core working set against 64 MiB VMEM (vmem_limit_bytes).
    vmem = pl.BlockSpec(memory_space=pltpu.MemorySpace.VMEM)
    out = pl.pallas_call(
        _make_lstm_rul_kernel(T, Bp, D, H),
        out_shape=jax.ShapeDtypeStruct((Bp, 4 * H), jnp.float32),
        in_specs=[vmem, vmem],
        out_specs=vmem,
    )(x_flat, slab)

    feat = out[:B, :H]            # (B, H)
    pred = out[:B, H:H + 1]       # (B, 1)
    return pred, feat


# -----------------------------------------------------------------------------
# Pure-JAX reference (correctness sanity check)
# -----------------------------------------------------------------------------
def reference_forward(x_btd, params):
    H = params["w_hh0"].shape[1]
    B = x_btd.shape[0]

    def lstm_layer(seq, w_ih, w_hh, b_ih, b_hh):
        def step(carry, x_t):
            h, c = carry
            gates = x_t @ w_ih.T + h @ w_hh.T + b_ih + b_hh
            i, f, g, o = jnp.split(gates, 4, axis=-1)
            c = jax.nn.sigmoid(f) * c + jax.nn.sigmoid(i) * jnp.tanh(g)
            h = jax.nn.sigmoid(o) * jnp.tanh(c)
            return (h, c), h
        zeros = jnp.zeros((B, H), jnp.float32)
        _, hs = lax.scan(step, (zeros, zeros), jnp.transpose(seq, (1, 0, 2)))
        return jnp.transpose(hs, (1, 0, 2))

    s0 = lstm_layer(x_btd, params["w_ih0"], params["w_hh0"],
                    params["b_ih0"], params["b_hh0"])
    s1 = lstm_layer(s0, params["w_ih1"], params["w_hh1"],
                    params["b_ih1"], params["b_hh1"])
    feat = s1[:, -1, :]
    h1 = jax.nn.relu(feat @ params["wr1"].T + params["br1"])
    h2 = jax.nn.relu(h1 @ params["wr2"].T + params["br2"])
    pred = h2 @ params["wr3"].T + params["br3"]
    return pred, feat


if __name__ == "__main__":
    B, T, D, H = 2, 8, 8, 32

    key = jax.random.PRNGKey(0)
    kx, kp = jax.random.split(key)
    x = jax.random.normal(kx, (B, T, D), jnp.float32)
    params = init_params(kp, input_dim=D, hidden_dim=H)

    # One-time weight packing (outside the per-call forward).
    slab = prepare_params(params)

    pred, feat = jax.jit(lstm_rul_forward)(x, slab)
    jax.block_until_ready((pred, feat))

    pred_ref, feat_ref = reference_forward(x, params)
    assert pred.shape == (B, 1) and feat.shape == (B, H)
    assert jnp.allclose(pred, pred_ref, atol=1e-4), "prediction mismatch"
    assert jnp.allclose(feat, feat_ref, atol=1e-4), "feature mismatch"

    print("KERNEL_OK")
</pallas_src>

<mosaic_0001>
module attributes {stable_mosaic.version = 11 : i64} {
  func.func @kernel(%arg0: memref<64x8xf32, #tpu.memory_space<vmem>>, %arg1: memref<192x128xf32, #tpu.memory_space<vmem>>, %arg2: memref<8x128xf32, #tpu.memory_space<vmem>>) attributes {dimension_semantics = [], scalar_prefetch = 0 : i64, scratch_operands = 0 : i64, tpu.core_type = #tpu.core_type<tc>} {
    %c0 = arith.constant 0 : index
    %c0_0 = arith.constant 0 : index
    %0 = vector.load %arg1[%c0, %c0_0] : memref<192x128xf32, #tpu.memory_space<vmem>>, vector<8x128xf32>
    %c8 = arith.constant 8 : index
    %c0_1 = arith.constant 0 : index
    %1 = vector.load %arg1[%c8, %c0_1] : memref<192x128xf32, #tpu.memory_space<vmem>>, vector<32x128xf32>
    %c40 = arith.constant 40 : index
    %c0_2 = arith.constant 0 : index
    %2 = vector.load %arg1[%c40, %c0_2] : memref<192x128xf32, #tpu.memory_space<vmem>>, vector<64x128xf32>
    %c104 = arith.constant 104 : index
    %c0_3 = arith.constant 0 : index
    %3 = vector.load %arg1[%c104, %c0_3] : memref<192x128xf32, #tpu.memory_space<vmem>>, vector<32x32xf32>
    %c136 = arith.constant 136 : index
    %c0_4 = arith.constant 0 : index
    %4 = vector.load %arg1[%c136, %c0_4] : memref<192x128xf32, #tpu.memory_space<vmem>>, vector<32x16xf32>
    %c168 = arith.constant 168 : index
    %c0_5 = arith.constant 0 : index
    %5 = vector.load %arg1[%c168, %c0_5] : memref<192x128xf32, #tpu.memory_space<vmem>>, vector<16x1xf32>
    %c184 = arith.constant 184 : index
    %c0_6 = arith.constant 0 : index
    %6 = vector.load %arg1[%c184, %c0_6] : memref<192x128xf32, #tpu.memory_space<vmem>>, vector<1x128xf32>
    %c185 = arith.constant 185 : index
    %c0_7 = arith.constant 0 : index
    %7 = vector.load %arg1[%c185, %c0_7] : memref<192x128xf32, #tpu.memory_space<vmem>>, vector<1x128xf32>
    %c186 = arith.constant 186 : index
    %c0_8 = arith.constant 0 : index
    %8 = vector.load %arg1[%c186, %c0_8] : memref<192x128xf32, #tpu.memory_space<vmem>>, vector<1x32xf32>
    %c187 = arith.constant 187 : index
    %c0_9 = arith.constant 0 : index
    %9 = vector.load %arg1[%c187, %c0_9] : memref<192x128xf32, #tpu.memory_space<vmem>>, vector<1x16xf32>
    %c188 = arith.constant 188 : index
    %c0_10 = arith.constant 0 : index
    %10 = vector.load %arg1[%c188, %c0_10] : memref<192x128xf32, #tpu.memory_space<vmem>>, vector<1x1xf32>
    %c0_11 = arith.constant 0 : index
    %c0_12 = arith.constant 0 : index
    %11 = vector.load %arg0[%c0_11, %c0_12] : memref<64x8xf32, #tpu.memory_space<vmem>>, vector<64x8xf32>
    %cst = arith.constant dense<0.000000e+00> : vector<64x128xf32>
    %12 = tpu.matmul %11, %0, %cst {dimension_numbers = #tpu.dot_dimension_numbers<[1], [0], [0], [1], [0, 0, 1, 1], [], []>} : vector<64x8xf32>, vector<8x128xf32>, vector<64x128xf32> -> vector<64x128xf32>
    %13 = vector.broadcast %6 : vector<1x128xf32> to vector<64x128xf32>
    %14 = arith.addf %12, %13 : vector<64x128xf32>
    %cst_13 = arith.constant 0.000000e+00 : f32
    %15 = vector.broadcast %cst_13 : f32 to vector<8x32xf32>
    %16 = vector.extract_strided_slice %14 {offsets = [0, 0], sizes = [8, 128], strides = [1, 1]} : vector<64x128xf32> to vector<8x128xf32>
    %cst_14 = arith.constant dense<0.000000e+00> : vector<8x128xf32>
    %17 = tpu.matmul %15, %1, %cst_14 {dimension_numbers = #tpu.dot_dimension_numbers<[1], [0], [0], [1], [0, 0, 1, 1], [], []>} : vector<8x32xf32>, vector<32x128xf32>, vector<8x128xf32> -> vector<8x128xf32>
    %18 = arith.addf %16, %17 : vector<8x128xf32>
    %19 = arith.negf %18 : vector<8x128xf32>
    %20 = math.exp %19 : vector<8x128xf32>
    %cst_15 = arith.constant 1.000000e+00 : f32
    %21 = vector.broadcast %cst_15 : f32 to vector<8x128xf32>
    %22 = arith.addf %21, %20 : vector<8x128xf32>
    %23 = arith.divf %21, %22 : vector<8x128xf32>
    %24 = math.tanh %18 : vector<8x128xf32>
    %25 = vector.extract_strided_slice %23 {offsets = [0, 0], sizes = [8, 32], strides = [1, 1]} : vector<8x128xf32> to vector<8x32xf32>
    %26 = vector.extract_strided_slice %23 {offsets = [0, 32], sizes = [8, 32], strides = [1, 1]} : vector<8x128xf32> to vector<8x32xf32>
    %27 = vector.extract_strided_slice %24 {offsets = [0, 64], sizes = [8, 32], strides = [1, 1]} : vector<8x128xf32> to vector<8x32xf32>
    %28 = vector.extract_strided_slice %23 {offsets = [0, 96], sizes = [8, 32], strides = [1, 1]} : vector<8x128xf32> to vector<8x32xf32>
    %29 = arith.mulf %26, %15 : vector<8x32xf32>
    %30 = arith.mulf %25, %27 : vector<8x32xf32>
    %31 = arith.addf %29, %30 : vector<8x32xf32>
    %32 = math.tanh %31 : vector<8x32xf32>
    %33 = arith.mulf %28, %32 : vector<8x32xf32>
    %34 = tpu.concatenate %33, %15 in 1 : vector<8x32xf32>, vector<8x32xf32> -> vector<8x64xf32>
    %cst_16 = arith.constant dense<0.000000e+00> : vector<8x128xf32>
    %35 = tpu.matmul %34, %2, %cst_16 {dimension_numbers = #tpu.dot_dimension_numbers<[1], [0], [0], [1], [0, 0, 1, 1], [], []>} : vector<8x64xf32>, vector<64x128xf32>, vector<8x128xf32> -> vector<8x128xf32>
    %36 = vector.broadcast %7 : vector<1x128xf32> to vector<8x128xf32>
    %37 = arith.addf %35, %36 : vector<8x128xf32>
    %38 = arith.negf %37 : vector<8x128xf32>
    %39 = math.exp %38 : vector<8x128xf32>
    %cst_17 = arith.constant 1.000000e+00 : f32
    %40 = vector.broadcast %cst_17 : f32 to vector<8x128xf32>
    %41 = arith.addf %40, %39 : vector<8x128xf32>
    %42 = arith.divf %40, %41 : vector<8x128xf32>
    %43 = math.tanh %37 : vector<8x128xf32>
    %44 = vector.extract_strided_slice %42 {offsets = [0, 0], sizes = [8, 32], strides = [1, 1]} : vector<8x128xf32> to vector<8x32xf32>
    %45 = vector.extract_strided_slice %42 {offsets = [0, 32], sizes = [8, 32], strides = [1, 1]} : vector<8x128xf32> to vector<8x32xf32>
    %46 = vector.extract_strided_slice %43 {offsets = [0, 64], sizes = [8, 32], strides = [1, 1]} : vector<8x128xf32> to vector<8x32xf32>
    %47 = vector.extract_strided_slice %42 {offsets = [0, 96], sizes = [8, 32], strides = [1, 1]} : vector<8x128xf32> to vector<8x32xf32>
    %48 = arith.mulf %45, %15 : vector<8x32xf32>
    %49 = arith.mulf %44, %46 : vector<8x32xf32>
    %50 = arith.addf %48, %49 : vector<8x32xf32>
    %51 = math.tanh %50 : vector<8x32xf32>
    %52 = arith.mulf %47, %51 : vector<8x32xf32>
    %53 = vector.extract_strided_slice %14 {offsets = [8, 0], sizes = [8, 128], strides = [1, 1]} : vector<64x128xf32> to vector<8x128xf32>
    %cst_18 = arith.constant dense<0.000000e+00> : vector<8x128xf32>
    %54 = tpu.matmul %33, %1, %cst_18 {dimension_numbers = #tpu.dot_dimension_numbers<[1], [0], [0], [1], [0, 0, 1, 1], [], []>} : vector<8x32xf32>, vector<32x128xf32>, vector<8x128xf32> -> vector<8x128xf32>
    %55 = arith.addf %53, %54 : vector<8x128xf32>
    %56 = arith.negf %55 : vector<8x128xf32>
    %57 = math.exp %56 : vector<8x128xf32>
    %cst_19 = arith.constant 1.000000e+00 : f32
    %58 = vector.broadcast %cst_19 : f32 to vector<8x128xf32>
    %59 = arith.addf %58, %57 : vector<8x128xf32>
    %60 = arith.divf %58, %59 : vector<8x128xf32>
    %61 = math.tanh %55 : vector<8x128xf32>
    %62 = vector.extract_strided_slice %60 {offsets = [0, 0], sizes = [8, 32], strides = [1, 1]} : vector<8x128xf32> to vector<8x32xf32>
    %63 = vector.extract_strided_slice %60 {offsets = [0, 32], sizes = [8, 32], strides = [1, 1]} : vector<8x128xf32> to vector<8x32xf32>
    %64 = vector.extract_strided_slice %61 {offsets = [0, 64], sizes = [8, 32], strides = [1, 1]} : vector<8x128xf32> to vector<8x32xf32>
    %65 = vector.extract_strided_slice %60 {offsets = [0, 96], sizes = [8, 32], strides = [1, 1]} : vector<8x128xf32> to vector<8x32xf32>
    %66 = arith.mulf %63, %31 : vector<8x32xf32>
    %67 = arith.mulf %62, %64 : vector<8x32xf32>
    %68 = arith.addf %66, %67 : vector<8x32xf32>
    %69 = math.tanh %68 : vector<8x32xf32>
    %70 = arith.mulf %65, %69 : vector<8x32xf32>
    %71 = tpu.concatenate %70, %52 in 1 : vector<8x32xf32>, vector<8x32xf32> -> vector<8x64xf32>
    %cst_20 = arith.constant dense<0.000000e+00> : vector<8x128xf32>
    %72 = tpu.matmul %71, %2, %cst_20 {dimension_numbers = #tpu.dot_dimension_numbers<[1], [0], [0], [1], [0, 0, 1, 1], [], []>} : vector<8x64xf32>, vector<64x128xf32>, vector<8x128xf32> -> vector<8x128xf32>
    %73 = vector.broadcast %7 : vector<1x128xf32> to vector<8x128xf32>
    %74 = arith.addf %72, %73 : vector<8x128xf32>
    %75 = arith.negf %74 : vector<8x128xf32>
    %76 = math.exp %75 : vector<8x128xf32>
    %cst_21 = arith.constant 1.000000e+00 : f32
    %77 = vector.broadcast %cst_21 : f32 to vector<8x128xf32>
    %78 = arith.addf %77, %76 : vector<8x128xf32>
    %79 = arith.divf %77, %78 : vector<8x128xf32>
    %80 = math.tanh %74 : vector<8x128xf32>
    %81 = vector.extract_strided_slice %79 {offsets = [0, 0], sizes = [8, 32], strides = [1, 1]} : vector<8x128xf32> to vector<8x32xf32>
    %82 = vector.extract_strided_slice %79 {offsets = [0, 32], sizes = [8, 32], strides = [1, 1]} : vector<8x128xf32> to vector<8x32xf32>
    %83 = vector.extract_strided_slice %80 {offsets = [0, 64], sizes = [8, 32], strides = [1, 1]} : vector<8x128xf32> to vector<8x32xf32>
    %84 = vector.extract_strided_slice %79 {offsets = [0, 96], sizes = [8, 32], strides = [1, 1]} : vector<8x128xf32> to vector<8x32xf32>
    %85 = arith.mulf %82, %50 : vector<8x32xf32>
    %86 = arith.mulf %81, %83 : vector<8x32xf32>
    %87 = arith.addf %85, %86 : vector<8x32xf32>
    %88 = math.tanh %87 : vector<8x32xf32>
    %89 = arith.mulf %84, %88 : vector<8x32xf32>
    %90 = vector.extract_strided_slice %14 {offsets = [16, 0], sizes = [8, 128], strides = [1, 1]} : vector<64x128xf32> to vector<8x128xf32>
    %cst_22 = arith.constant dense<0.000000e+00> : vector<8x128xf32>
    %91 = tpu.matmul %70, %1, %cst_22 {dimension_numbers = #tpu.dot_dimension_numbers<[1], [0], [0], [1], [0, 0, 1, 1], [], []>} : vector<8x32xf32>, vector<32x128xf32>, vector<8x128xf32> -> vector<8x128xf32>
    %92 = arith.addf %90, %91 : vector<8x128xf32>
    %93 = arith.negf %92 : vector<8x128xf32>
    %94 = math.exp %93 : vector<8x128xf32>
    %cst_23 = arith.constant 1.000000e+00 : f32
    %95 = vector.broadcast %cst_23 : f32 to vector<8x128xf32>
    %96 = arith.addf %95, %94 : vector<8x128xf32>
    %97 = arith.divf %95, %96 : vector<8x128xf32>
    %98 = math.tanh %92 : vector<8x128xf32>
    %99 = vector.extract_strided_slice %97 {offsets = [0, 0], sizes = [8, 32], strides = [1, 1]} : vector<8x128xf32> to vector<8x32xf32>
    %100 = vector.extract_strided_slice %97 {offsets = [0, 32], sizes = [8, 32], strides = [1, 1]} : vector<8x128xf32> to vector<8x32xf32>
    %101 = vector.extract_strided_slice %98 {offsets = [0, 64], sizes = [8, 32], strides = [1, 1]} : vector<8x128xf32> to vector<8x32xf32>
    %102 = vector.extract_strided_slice %97 {offsets = [0, 96], sizes = [8, 32], strides = [1, 1]} : vector<8x128xf32> to vector<8x32xf32>
    %103 = arith.mulf %100, %68 : vector<8x32xf32>
    %104 = arith.mulf %99, %101 : vector<8x32xf32>
    %105 = arith.addf %103, %104 : vector<8x32xf32>
    %106 = math.tanh %105 : vector<8x32xf32>
    %107 = arith.mulf %102, %106 : vector<8x32xf32>
    %108 = tpu.concatenate %107, %89 in 1 : vector<8x32xf32>, vector<8x32xf32> -> vector<8x64xf32>
    %cst_24 = arith.constant dense<0.000000e+00> : vector<8x128xf32>
    %109 = tpu.matmul %108, %2, %cst_24 {dimension_numbers = #tpu.dot_dimension_numbers<[1], [0], [0], [1], [0, 0, 1, 1], [], []>} : vector<8x64xf32>, vector<64x128xf32>, vector<8x128xf32> -> vector<8x128xf32>
    %110 = vector.broadcast %7 : vector<1x128xf32> to vector<8x128xf32>
    %111 = arith.addf %109, %110 : vector<8x128xf32>
    %112 = arith.negf %111 : vector<8x128xf32>
    %113 = math.exp %112 : vector<8x128xf32>
    %cst_25 = arith.constant 1.000000e+00 : f32
    %114 = vector.broadcast %cst_25 : f32 to vector<8x128xf32>
    %115 = arith.addf %114, %113 : vector<8x128xf32>
    %116 = arith.divf %114, %115 : vector<8x128xf32>
    %117 = math.tanh %111 : vector<8x128xf32>
    %118 = vector.extract_strided_slice %116 {offsets = [0, 0], sizes = [8, 32], strides = [1, 1]} : vector<8x128xf32> to vector<8x32xf32>
    %119 = vector.extract_strided_slice %116 {offsets = [0, 32], sizes = [8, 32], strides = [1, 1]} : vector<8x128xf32> to vector<8x32xf32>
    %120 = vector.extract_strided_slice %117 {offsets = [0, 64], sizes = [8, 32], strides = [1, 1]} : vector<8x128xf32> to vector<8x32xf32>
    %121 = vector.extract_strided_slice %116 {offsets = [0, 96], sizes = [8, 32], strides = [1, 1]} : vector<8x128xf32> to vector<8x32xf32>
    %122 = arith.mulf %119, %87 : vector<8x32xf32>
    %123 = arith.mulf %118, %120 : vector<8x32xf32>
    %124 = arith.addf %122, %123 : vector<8x32xf32>
    %125 = math.tanh %124 : vector<8x32xf32>
    %126 = arith.mulf %121, %125 : vector<8x32xf32>
    %127 = vector.extract_strided_slice %14 {offsets = [24, 0], sizes = [8, 128], strides = [1, 1]} : vector<64x128xf32> to vector<8x128xf32>
    %cst_26 = arith.constant dense<0.000000e+00> : vector<8x128xf32>
    %128 = tpu.matmul %107, %1, %cst_26 {dimension_numbers = #tpu.dot_dimension_numbers<[1], [0], [0], [1], [0, 0, 1, 1], [], []>} : vector<8x32xf32>, vector<32x128xf32>, vector<8x128xf32> -> vector<8x128xf32>
    %129 = arith.addf %127, %128 : vector<8x128xf32>
    %130 = arith.negf %129 : vector<8x128xf32>
    %131 = math.exp %130 : vector<8x128xf32>
    %cst_27 = arith.constant 1.000000e+00 : f32
    %132 = vector.broadcast %cst_27 : f32 to vector<8x128xf32>
    %133 = arith.addf %132, %131 : vector<8x128xf32>
    %134 = arith.divf %132, %133 : vector<8x128xf32>
    %135 = math.tanh %129 : vector<8x128xf32>
    %136 = vector.extract_strided_slice %134 {offsets = [0, 0], sizes = [8, 32], strides = [1, 1]} : vector<8x128xf32> to vector<8x32xf32>
    %137 = vector.extract_strided_slice %134 {offsets = [0, 32], sizes = [8, 32], strides = [1, 1]} : vector<8x128xf32> to vector<8x32xf32>
    %138 = vector.extract_strided_slice %135 {offsets = [0, 64], sizes = [8, 32], strides = [1, 1]} : vector<8x128xf32> to vector<8x32xf32>
    %139 = vector.extract_strided_slice %134 {offsets = [0, 96], sizes = [8, 32], strides = [1, 1]} : vector<8x128xf32> to vector<8x32xf32>
    %140 = arith.mulf %137, %105 : vector<8x32xf32>
    %141 = arith.mulf %136, %138 : vector<8x32xf32>
    %142 = arith.addf %140, %141 : vector<8x32xf32>
    %143 = math.tanh %142 : vector<8x32xf32>
    %144 = arith.mulf %139, %143 : vector<8x32xf32>
    %145 = tpu.concatenate %144, %126 in 1 : vector<8x32xf32>, vector<8x32xf32> -> vector<8x64xf32>
    %cst_28 = arith.constant dense<0.000000e+00> : vector<8x128xf32>
    %146 = tpu.matmul %145, %2, %cst_28 {dimension_numbers = #tpu.dot_dimension_numbers<[1], [0], [0], [1], [0, 0, 1, 1], [], []>} : vector<8x64xf32>, vector<64x128xf32>, vector<8x128xf32> -> vector<8x128xf32>
    %147 = vector.broadcast %7 : vector<1x128xf32> to vector<8x128xf32>
    %148 = arith.addf %146, %147 : vector<8x128xf32>
    %149 = arith.negf %148 : vector<8x128xf32>
    %150 = math.exp %149 : vector<8x128xf32>
    %cst_29 = arith.constant 1.000000e+00 : f32
    %151 = vector.broadcast %cst_29 : f32 to vector<8x128xf32>
    %152 = arith.addf %151, %150 : vector<8x128xf32>
    %153 = arith.divf %151, %152 : vector<8x128xf32>
    %154 = math.tanh %148 : vector<8x128xf32>
    %155 = vector.extract_strided_slice %153 {offsets = [0, 0], sizes = [8, 32], strides = [1, 1]} : vector<8x128xf32> to vector<8x32xf32>
    %156 = vector.extract_strided_slice %153 {offsets = [0, 32], sizes = [8, 32], strides = [1, 1]} : vector<8x128xf32> to vector<8x32xf32>
    %157 = vector.extract_strided_slice %154 {offsets = [0, 64], sizes = [8, 32], strides = [1, 1]} : vector<8x128xf32> to vector<8x32xf32>
    %158 = vector.extract_strided_slice %153 {offsets = [0, 96], sizes = [8, 32], strides = [1, 1]} : vector<8x128xf32> to vector<8x32xf32>
    %159 = arith.mulf %156, %124 : vector<8x32xf32>
    %160 = arith.mulf %155, %157 : vector<8x32xf32>
    %161 = arith.addf %159, %160 : vector<8x32xf32>
    %162 = math.tanh %161 : vector<8x32xf32>
    %163 = arith.mulf %158, %162 : vector<8x32xf32>
    %164 = vector.extract_strided_slice %14 {offsets = [32, 0], sizes = [8, 128], strides = [1, 1]} : vector<64x128xf32> to vector<8x128xf32>
    %cst_30 = arith.constant dense<0.000000e+00> : vector<8x128xf32>
    %165 = tpu.matmul %144, %1, %cst_30 {dimension_numbers = #tpu.dot_dimension_numbers<[1], [0], [0], [1], [0, 0, 1, 1], [], []>} : vector<8x32xf32>, vector<32x128xf32>, vector<8x128xf32> -> vector<8x128xf32>
    %166 = arith.addf %164, %165 : vector<8x128xf32>
    %167 = arith.negf %166 : vector<8x128xf32>
    %168 = math.exp %167 : vector<8x128xf32>
    %cst_31 = arith.constant 1.000000e+00 : f32
    %169 = vector.broadcast %cst_31 : f32 to vector<8x128xf32>
    %170 = arith.addf %169, %168 : vector<8x128xf32>
    %171 = arith.divf %169, %170 : vector<8x128xf32>
    %172 = math.tanh %166 : vector<8x128xf32>
    %173 = vector.extract_strided_slice %171 {offsets = [0, 0], sizes = [8, 32], strides = [1, 1]} : vector<8x128xf32> to vector<8x32xf32>
    %174 = vector.extract_strided_slice %171 {offsets = [0, 32], sizes = [8, 32], strides = [1, 1]} : vector<8x128xf32> to vector<8x32xf32>
    %175 = vector.extract_strided_slice %172 {offsets = [0, 64], sizes = [8, 32], strides = [1, 1]} : vector<8x128xf32> to vector<8x32xf32>
    %176 = vector.extract_strided_slice %171 {offsets = [0, 96], sizes = [8, 32], strides = [1, 1]} : vector<8x128xf32> to vector<8x32xf32>
    %177 = arith.mulf %174, %142 : vector<8x32xf32>
    %178 = arith.mulf %173, %175 : vector<8x32xf32>
    %179 = arith.addf %177, %178 : vector<8x32xf32>
    %180 = math.tanh %179 : vector<8x32xf32>
    %181 = arith.mulf %176, %180 : vector<8x32xf32>
    %182 = tpu.concatenate %181, %163 in 1 : vector<8x32xf32>, vector<8x32xf32> -> vector<8x64xf32>
    %cst_32 = arith.constant dense<0.000000e+00> : vector<8x128xf32>
    %183 = tpu.matmul %182, %2, %cst_32 {dimension_numbers = #tpu.dot_dimension_numbers<[1], [0], [0], [1], [0, 0, 1, 1], [], []>} : vector<8x64xf32>, vector<64x128xf32>, vector<8x128xf32> -> vector<8x128xf32>
    %184 = vector.broadcast %7 : vector<1x128xf32> to vector<8x128xf32>
    %185 = arith.addf %183, %184 : vector<8x128xf32>
    %186 = arith.negf %185 : vector<8x128xf32>
    %187 = math.exp %186 : vector<8x128xf32>
    %cst_33 = arith.constant 1.000000e+00 : f32
    %188 = vector.broadcast %cst_33 : f32 to vector<8x128xf32>
    %189 = arith.addf %188, %187 : vector<8x128xf32>
    %190 = arith.divf %188, %189 : vector<8x128xf32>
    %191 = math.tanh %185 : vector<8x128xf32>
    %192 = vector.extract_strided_slice %190 {offsets = [0, 0], sizes = [8, 32], strides = [1, 1]} : vector<8x128xf32> to vector<8x32xf32>
    %193 = vector.extract_strided_slice %190 {offsets = [0, 32], sizes = [8, 32], strides = [1, 1]} : vector<8x128xf32> to vector<8x32xf32>
    %194 = vector.extract_strided_slice %191 {offsets = [0, 64], sizes = [8, 32], strides = [1, 1]} : vector<8x128xf32> to vector<8x32xf32>
    %195 = vector.extract_strided_slice %190 {offsets = [0, 96], sizes = [8, 32], strides = [1, 1]} : vector<8x128xf32> to vector<8x32xf32>
    %196 = arith.mulf %193, %161 : vector<8x32xf32>
    %197 = arith.mulf %192, %194 : vector<8x32xf32>
    %198 = arith.addf %196, %197 : vector<8x32xf32>
    %199 = math.tanh %198 : vector<8x32xf32>
    %200 = arith.mulf %195, %199 : vector<8x32xf32>
    %201 = vector.extract_strided_slice %14 {offsets = [40, 0], sizes = [8, 128], strides = [1, 1]} : vector<64x128xf32> to vector<8x128xf32>
    %cst_34 = arith.constant dense<0.000000e+00> : vector<8x128xf32>
    %202 = tpu.matmul %181, %1, %cst_34 {dimension_numbers = #tpu.dot_dimension_numbers<[1], [0], [0], [1], [0, 0, 1, 1], [], []>} : vector<8x32xf32>, vector<32x128xf32>, vector<8x128xf32> -> vector<8x128xf32>
    %203 = arith.addf %201, %202 : vector<8x128xf32>
    %204 = arith.negf %203 : vector<8x128xf32>
    %205 = math.exp %204 : vector<8x128xf32>
    %cst_35 = arith.constant 1.000000e+00 : f32
    %206 = vector.broadcast %cst_35 : f32 to vector<8x128xf32>
    %207 = arith.addf %206, %205 : vector<8x128xf32>
    %208 = arith.divf %206, %207 : vector<8x128xf32>
    %209 = math.tanh %203 : vector<8x128xf32>
    %210 = vector.extract_strided_slice %208 {offsets = [0, 0], sizes = [8, 32], strides = [1, 1]} : vector<8x128xf32> to vector<8x32xf32>
    %211 = vector.extract_strided_slice %208 {offsets = [0, 32], sizes = [8, 32], strides = [1, 1]} : vector<8x128xf32> to vector<8x32xf32>
    %212 = vector.extract_strided_slice %209 {offsets = [0, 64], sizes = [8, 32], strides = [1, 1]} : vector<8x128xf32> to vector<8x32xf32>
    %213 = vector.extract_strided_slice %208 {offsets = [0, 96], sizes = [8, 32], strides = [1, 1]} : vector<8x128xf32> to vector<8x32xf32>
    %214 = arith.mulf %211, %179 : vector<8x32xf32>
    %215 = arith.mulf %210, %212 : vector<8x32xf32>
    %216 = arith.addf %214, %215 : vector<8x32xf32>
    %217 = math.tanh %216 : vector<8x32xf32>
    %218 = arith.mulf %213, %217 : vector<8x32xf32>
    %219 = tpu.concatenate %218, %200 in 1 : vector<8x32xf32>, vector<8x32xf32> -> vector<8x64xf32>
    %cst_36 = arith.constant dense<0.000000e+00> : vector<8x128xf32>
    %220 = tpu.matmul %219, %2, %cst_36 {dimension_numbers = #tpu.dot_dimension_numbers<[1], [0], [0], [1], [0, 0, 1, 1], [], []>} : vector<8x64xf32>, vector<64x128xf32>, vector<8x128xf32> -> vector<8x128xf32>
    %221 = vector.broadcast %7 : vector<1x128xf32> to vector<8x128xf32>
    %222 = arith.addf %220, %221 : vector<8x128xf32>
    %223 = arith.negf %222 : vector<8x128xf32>
    %224 = math.exp %223 : vector<8x128xf32>
    %cst_37 = arith.constant 1.000000e+00 : f32
    %225 = vector.broadcast %cst_37 : f32 to vector<8x128xf32>
    %226 = arith.addf %225, %224 : vector<8x128xf32>
    %227 = arith.divf %225, %226 : vector<8x128xf32>
    %228 = math.tanh %222 : vector<8x128xf32>
    %229 = vector.extract_strided_slice %227 {offsets = [0, 0], sizes = [8, 32], strides = [1, 1]} : vector<8x128xf32> to vector<8x32xf32>
    %230 = vector.extract_strided_slice %227 {offsets = [0, 32], sizes = [8, 32], strides = [1, 1]} : vector<8x128xf32> to vector<8x32xf32>
    %231 = vector.extract_strided_slice %228 {offsets = [0, 64], sizes = [8, 32], strides = [1, 1]} : vector<8x128xf32> to vector<8x32xf32>
    %232 = vector.extract_strided_slice %227 {offsets = [0, 96], sizes = [8, 32], strides = [1, 1]} : vector<8x128xf32> to vector<8x32xf32>
    %233 = arith.mulf %230, %198 : vector<8x32xf32>
    %234 = arith.mulf %229, %231 : vector<8x32xf32>
    %235 = arith.addf %233, %234 : vector<8x32xf32>
    %236 = math.tanh %235 : vector<8x32xf32>
    %237 = arith.mulf %232, %236 : vector<8x32xf32>
    %238 = vector.extract_strided_slice %14 {offsets = [48, 0], sizes = [8, 128], strides = [1, 1]} : vector<64x128xf32> to vector<8x128xf32>
    %cst_38 = arith.constant dense<0.000000e+00> : vector<8x128xf32>
    %239 = tpu.matmul %218, %1, %cst_38 {dimension_numbers = #tpu.dot_dimension_numbers<[1], [0], [0], [1], [0, 0, 1, 1], [], []>} : vector<8x32xf32>, vector<32x128xf32>, vector<8x128xf32> -> vector<8x128xf32>
    %240 = arith.addf %238, %239 : vector<8x128xf32>
    %241 = arith.negf %240 : vector<8x128xf32>
    %242 = math.exp %241 : vector<8x128xf32>
    %cst_39 = arith.constant 1.000000e+00 : f32
    %243 = vector.broadcast %cst_39 : f32 to vector<8x128xf32>
    %244 = arith.addf %243, %242 : vector<8x128xf32>
    %245 = arith.divf %243, %244 : vector<8x128xf32>
    %246 = math.tanh %240 : vector<8x128xf32>
    %247 = vector.extract_strided_slice %245 {offsets = [0, 0], sizes = [8, 32], strides = [1, 1]} : vector<8x128xf32> to vector<8x32xf32>
    %248 = vector.extract_strided_slice %245 {offsets = [0, 32], sizes = [8, 32], strides = [1, 1]} : vector<8x128xf32> to vector<8x32xf32>
    %249 = vector.extract_strided_slice %246 {offsets = [0, 64], sizes = [8, 32], strides = [1, 1]} : vector<8x128xf32> to vector<8x32xf32>
    %250 = vector.extract_strided_slice %245 {offsets = [0, 96], sizes = [8, 32], strides = [1, 1]} : vector<8x128xf32> to vector<8x32xf32>
    %251 = arith.mulf %248, %216 : vector<8x32xf32>
    %252 = arith.mulf %247, %249 : vector<8x32xf32>
    %253 = arith.addf %251, %252 : vector<8x32xf32>
    %254 = math.tanh %253 : vector<8x32xf32>
    %255 = arith.mulf %250, %254 : vector<8x32xf32>
    %256 = tpu.concatenate %255, %237 in 1 : vector<8x32xf32>, vector<8x32xf32> -> vector<8x64xf32>
    %cst_40 = arith.constant dense<0.000000e+00> : vector<8x128xf32>
    %257 = tpu.matmul %256, %2, %cst_40 {dimension_numbers = #tpu.dot_dimension_numbers<[1], [0], [0], [1], [0, 0, 1, 1], [], []>} : vector<8x64xf32>, vector<64x128xf32>, vector<8x128xf32> -> vector<8x128xf32>
    %258 = vector.broadcast %7 : vector<1x128xf32> to vector<8x128xf32>
    %259 = arith.addf %257, %258 : vector<8x128xf32>
    %260 = arith.negf %259 : vector<8x128xf32>
    %261 = math.exp %260 : vector<8x128xf32>
    %cst_41 = arith.constant 1.000000e+00 : f32
    %262 = vector.broadcast %cst_41 : f32 to vector<8x128xf32>
    %263 = arith.addf %262, %261 : vector<8x128xf32>
    %264 = arith.divf %262, %263 : vector<8x128xf32>
    %265 = math.tanh %259 : vector<8x128xf32>
    %266 = vector.extract_strided_slice %264 {offsets = [0, 0], sizes = [8, 32], strides = [1, 1]} : vector<8x128xf32> to vector<8x32xf32>
    %267 = vector.extract_strided_slice %264 {offsets = [0, 32], sizes = [8, 32], strides = [1, 1]} : vector<8x128xf32> to vector<8x32xf32>
    %268 = vector.extract_strided_slice %265 {offsets = [0, 64], sizes = [8, 32], strides = [1, 1]} : vector<8x128xf32> to vector<8x32xf32>
    %269 = vector.extract_strided_slice %264 {offsets = [0, 96], sizes = [8, 32], strides = [1, 1]} : vector<8x128xf32> to vector<8x32xf32>
    %270 = arith.mulf %267, %235 : vector<8x32xf32>
    %271 = arith.mulf %266, %268 : vector<8x32xf32>
    %272 = arith.addf %270, %271 : vector<8x32xf32>
    %273 = math.tanh %272 : vector<8x32xf32>
    %274 = arith.mulf %269, %273 : vector<8x32xf32>
    %275 = vector.extract_strided_slice %14 {offsets = [56, 0], sizes = [8, 128], strides = [1, 1]} : vector<64x128xf32> to vector<8x128xf32>
    %cst_42 = arith.constant dense<0.000000e+00> : vector<8x128xf32>
    %276 = tpu.matmul %255, %1, %cst_42 {dimension_numbers = #tpu.dot_dimension_numbers<[1], [0], [0], [1], [0, 0, 1, 1], [], []>} : vector<8x32xf32>, vector<32x128xf32>, vector<8x128xf32> -> vector<8x128xf32>
    %277 = arith.addf %275, %276 : vector<8x128xf32>
    %278 = arith.negf %277 : vector<8x128xf32>
    %279 = math.exp %278 : vector<8x128xf32>
    %cst_43 = arith.constant 1.000000e+00 : f32
    %280 = vector.broadcast %cst_43 : f32 to vector<8x128xf32>
    %281 = arith.addf %280, %279 : vector<8x128xf32>
    %282 = arith.divf %280, %281 : vector<8x128xf32>
    %283 = math.tanh %277 : vector<8x128xf32>
    %284 = vector.extract_strided_slice %282 {offsets = [0, 0], sizes = [8, 32], strides = [1, 1]} : vector<8x128xf32> to vector<8x32xf32>
    %285 = vector.extract_strided_slice %282 {offsets = [0, 32], sizes = [8, 32], strides = [1, 1]} : vector<8x128xf32> to vector<8x32xf32>
    %286 = vector.extract_strided_slice %283 {offsets = [0, 64], sizes = [8, 32], strides = [1, 1]} : vector<8x128xf32> to vector<8x32xf32>
    %287 = vector.extract_strided_slice %282 {offsets = [0, 96], sizes = [8, 32], strides = [1, 1]} : vector<8x128xf32> to vector<8x32xf32>
    %288 = arith.mulf %285, %253 : vector<8x32xf32>
    %289 = arith.mulf %284, %286 : vector<8x32xf32>
    %290 = arith.addf %288, %289 : vector<8x32xf32>
    %291 = math.tanh %290 : vector<8x32xf32>
    %292 = arith.mulf %287, %291 : vector<8x32xf32>
    %293 = tpu.concatenate %292, %274 in 1 : vector<8x32xf32>, vector<8x32xf32> -> vector<8x64xf32>
    %cst_44 = arith.constant dense<0.000000e+00> : vector<8x128xf32>
    %294 = tpu.matmul %293, %2, %cst_44 {dimension_numbers = #tpu.dot_dimension_numbers<[1], [0], [0], [1], [0, 0, 1, 1], [], []>} : vector<8x64xf32>, vector<64x128xf32>, vector<8x128xf32> -> vector<8x128xf32>
    %295 = vector.broadcast %7 : vector<1x128xf32> to vector<8x128xf32>
    %296 = arith.addf %294, %295 : vector<8x128xf32>
    %297 = arith.negf %296 : vector<8x128xf32>
    %298 = math.exp %297 : vector<8x128xf32>
    %cst_45 = arith.constant 1.000000e+00 : f32
    %299 = vector.broadcast %cst_45 : f32 to vector<8x128xf32>
    %300 = arith.addf %299, %298 : vector<8x128xf32>
    %301 = arith.divf %299, %300 : vector<8x128xf32>
    %302 = math.tanh %296 : vector<8x128xf32>
    %303 = vector.extract_strided_slice %301 {offsets = [0, 0], sizes = [8, 32], strides = [1, 1]} : vector<8x128xf32> to vector<8x32xf32>
    %304 = vector.extract_strided_slice %301 {offsets = [0, 32], sizes = [8, 32], strides = [1, 1]} : vector<8x128xf32> to vector<8x32xf32>
    %305 = vector.extract_strided_slice %302 {offsets = [0, 64], sizes = [8, 32], strides = [1, 1]} : vector<8x128xf32> to vector<8x32xf32>
    %306 = vector.extract_strided_slice %301 {offsets = [0, 96], sizes = [8, 32], strides = [1, 1]} : vector<8x128xf32> to vector<8x32xf32>
    %307 = arith.mulf %304, %272 : vector<8x32xf32>
    %308 = arith.mulf %303, %305 : vector<8x32xf32>
    %309 = arith.addf %307, %308 : vector<8x32xf32>
    %310 = math.tanh %309 : vector<8x32xf32>
    %311 = arith.mulf %306, %310 : vector<8x32xf32>
    %cst_46 = arith.constant dense<0.000000e+00> : vector<8x32xf32>
    %312 = tpu.matmul %311, %3, %cst_46 {dimension_numbers = #tpu.dot_dimension_numbers<[1], [0], [0], [1], [0, 0, 1, 1], [], []>} : vector<8x32xf32>, vector<32x32xf32>, vector<8x32xf32> -> vector<8x32xf32>
    %313 = vector.broadcast %8 : vector<1x32xf32> to vector<8x32xf32>
    %314 = arith.addf %312, %313 : vector<8x32xf32>
    %cst_47 = arith.constant 0.000000e+00 : f32
    %315 = vector.broadcast %cst_47 : f32 to vector<8x32xf32>
    %316 = arith.maximumf %314, %315 : vector<8x32xf32>
    %cst_48 = arith.constant dense<0.000000e+00> : vector<8x16xf32>
    %317 = tpu.matmul %316, %4, %cst_48 {dimension_numbers = #tpu.dot_dimension_numbers<[1], [0], [0], [1], [0, 0, 1, 1], [], []>} : vector<8x32xf32>, vector<32x16xf32>, vector<8x16xf32> -> vector<8x16xf32>
    %318 = vector.broadcast %9 : vector<1x16xf32> to vector<8x16xf32>
    %319 = arith.addf %317, %318 : vector<8x16xf32>
    %cst_49 = arith.constant 0.000000e+00 : f32
    %320 = vector.broadcast %cst_49 : f32 to vector<8x16xf32>
    %321 = arith.maximumf %319, %320 : vector<8x16xf32>
    %cst_50 = arith.constant dense<0.000000e+00> : vector<8x1xf32>
    %322 = tpu.matmul %321, %5, %cst_50 {dimension_numbers = #tpu.dot_dimension_numbers<[1], [0], [0], [1], [0, 0, 1, 1], [], []>} : vector<8x16xf32>, vector<16x1xf32>, vector<8x1xf32> -> vector<8x1xf32>
    %323 = vector.broadcast %10 : vector<1x1xf32> to vector<8x1xf32>
    %324 = arith.addf %322, %323 : vector<8x1xf32>
    %cst_51 = arith.constant 0.000000e+00 : f32
    %325 = vector.broadcast %cst_51 : f32 to vector<8x95xf32>
    %326 = tpu.concatenate %311, %324, %325 in 1 : vector<8x32xf32>, vector<8x1xf32>, vector<8x95xf32> -> vector<8x128xf32>
    %c0_52 = arith.constant 0 : index
    %c0_53 = arith.constant 0 : index
    %327 = vector.load %arg2[%c0_52, %c0_53] : memref<8x128xf32, #tpu.memory_space<vmem>>, vector<8x128xf32>
    tpu.vector_store %arg2[%c0_52, %c0_53], %326 {strides = array<i32>} : memref<8x128xf32, #tpu.memory_space<vmem>>, vector<8x128xf32>,
    return
  }
}

</mosaic_0001>

<bundles_post_ra>
// kernel: lstm_rul_forward.1
= control target key start
LH: loop header
LB: loop body
LE: loop exit
PB: predicated region body
PF: predicated region fallthrough
CT: control target
= control target key end

     0   :  { %vm51_vm0 = vcmask 64512   ;;  %v2667_v0 = vmov 0.0   ;;  %vm2668_vm1 = vmmov 0   ;;  %s2669_s25 = smov 64   ;;  %s2670_s26 = smov 32   ;;  %vm181_vm2 = vcmask 261120   ;;  %s3282_s1 = inlined_call_operand.vmem [shape: f32[192,128], index: 1, kind: input, shape index: {}]   ;;  %s3283_s0 = inlined_call_operand.vmem [shape: f32[64,8], index: 0, kind: input, shape index: {}]   ;;  %s3284_s2 = inlined_call_operand.vmem [shape: f32[8,128], index: 2, kind: output, shape index: {}]  }
   0x1   :  { %2252 = vmatprep.subr.mxu1 %v2667_v0  ;;  %v11_v1 = vld [vmem:[%s3282_s1] sm:$0xff]  ;;  %2260 = vmatprep.mubr.msk.f32.mxu1 %vm2668_vm1, %v2667_v0  ;;  %v40_v4 = vld [vmem:[%s3283_s0 + $0x8] sm:$0xff]  ;;  %v2707_v5 = vld [vmem:[%s3282_s1 + $0x18] sm:$0xff]  ;;  %vm289_vm3 = vcmask 523264   ;;  %vm1970_vm4 = vcmask 130048   ;;  %vm2050_vm5 = vcmask 269312  }
   0x2   :  { %v2693_v2 = vld [vmem:[%s3282_s1 + $0x20] sm:$0xff]  ;;  %2238 = vmatprep.subr.mxu0 %v11_v1  ;;  %v2715_v6 = vld [vmem:[%s3282_s1 + $0x10] sm:$0xff]  ;;  %v2723_v7 = vld [vmem:[%s3282_s1 + $0x8] sm:$0xff] }
   0x3   :  { %v39_v3 = vld [vmem:[%s3283_s0] sm:$0xff]  ;;  %2253 = vmatpush3.msra.mxu1 %v2693_v2  ;;  %2239 = vmatpush3.msra.mxu0 %v11_v1  ;;  %v2745_v9 = vld [vmem:[%s3282_s1 + $0xb8] ss:$0 sm:$0xff]  ;;  %v41_v26 = vld [vmem:[%s3283_s0 + $0x10] sm:$0xff] }
   0x4   :  { %2240 = vmatprep.mubr.msk.f32.mxu0 %vm51_vm0, %v39_v3  ;;  %2254 = vmatprep.subr.mxu1 %v2667_v0  ;;  %v2756_v25 = vld [vmem:[%s3282_s1 + $0x60] sm:$0xff]  ;;  %v42_v27 = vld [vmem:[%s3283_s0 + $0x18] sm:$0xff]  ;;  %v2779_v30 = vld [vmem:[%s3282_s1 + $0x50] sm:$0xff] }
   0x5   :  { %2241 = vmatmul.mubr.msk.f32.vlgmr.msra.gmra.mxu0 %vm51_vm0, %v40_v4  ;;  %2255 = vmatpush3.msra.mxu1 %v2707_v5  ;;  %v2769_v28 = vld [vmem:[%s3282_s1 + $0x58] sm:$0xff]  ;;  %v43_v29 = vld [vmem:[%s3283_s0 + $0x20] sm:$0xff]  ;;  %v44_v31 = vld [vmem:[%s3283_s0 + $0x28] sm:$0xff] }
   0x6   :  { %2263 = vmatprep.subr.mxu0 %v2667_v0  ;;  %2256 = vmatprep.subr.mxu1 %v2667_v0  ;;  %v2790_v32 = vld [vmem:[%s3282_s1 + $0x48] sm:$0xff]  ;;  %v45_v33 = vld [vmem:[%s3283_s0 + $0x30] sm:$0xff]  ;;  %v2801_v34 = vld [vmem:[%s3282_s1 + $0x40] sm:$0xff] }
   0x7   :  { %2257 = vmatpush3.msra.mxu1 %v2715_v6  ;;  %2264 = vmatpush3.msra.mxu0 %v2756_v25  ;;  %v46_v35 = vld [vmem:[%s3283_s0 + $0x38] sm:$0xff]  ;;  %v2820_v38 = vld [vmem:[%s3282_s1 + $0x30] sm:$0xff]  ;;  %v2828_v39 = vld [vmem:[%s3282_s1 + $0x28] sm:$0xff] }
   0x8   :  { %2258 = vmatprep.subr.mxu1 %v2667_v0  ;;  %2243 = vmatprep.mubr.msk.f32.mxu0 %vm51_vm0, %v41_v26  ;;  %v2812_v36 = vld [vmem:[%s3282_s1 + $0x38] sm:$0xff] }
   0x9   :  { %2259 = vmatpush3.msra.mxu1 %v2723_v7  ;;  %2265 = vmatprep.subr.mxu0 %v2667_v0  ;;  %v2885_v51 = vld [vmem:[%s3282_s1 + $0xb9] ss:$0 sm:$0xff] }
   0xa   :  { %2261 = vmatmul.mubr.f32.vlgmr.msra.gmra.mxu1 %v2667_v0  ;;  %2282 = vmatprep.subr.mxu1 %v2667_v0 }
   0xb   :  { %2283 = vmatpush3.msra.mxu1 %v2693_v2  ;;  %2290 = vmatprep.mubr.msk.f32.mxu1 %vm2668_vm1, %v2667_v0 }
   0xc   :  { %2284 = vmatprep.subr.mxu1 %v2667_v0  ;;  %2244 = vmatmul.mubr.msk.f32.gmra.mxu0 %vm51_vm0, %v42_v27 }
   0xd   :  { %2285 = vmatpush3.msra.mxu1 %v2707_v5  ;;  %2266 = vmatpush3.msra.mxu0 %v2769_v28 }
   0xe   :  { %2286 = vmatprep.subr.mxu1 %v2667_v0  ;;  %2246 = vmatprep.mubr.msk.f32.mxu0 %vm51_vm0, %v43_v29 }
   0xf   :  { %2287 = vmatpush3.msra.mxu1 %v2715_v6  ;;  %2267 = vmatprep.subr.mxu0 %v2667_v0 }
  0x10   :  { %2288 = vmatprep.subr.mxu1 %v2667_v0  ;;  %2268 = vmatpush3.msra.mxu0 %v2779_v30 }
  0x11   :  { %2289 = vmatpush3.msra.mxu1 %v2723_v7  ;;  %2269 = vmatprep.subr.mxu0 %v2667_v0 }
  0x12   :  { %2293 = vmatprep.subr.mxu1 %v2667_v0  ;;  %2247 = vmatmul.mubr.msk.f32.gmra.mxu0 %vm51_vm0, %v44_v31 }
  0x13   :  { %2270 = vmatpush3.msra.mxu0 %v2790_v32  ;;  %2249 = vmatprep.mubr.msk.f32.mxu0 %vm51_vm0, %v45_v33 }
  0x14   :  { %2271 = vmatprep.subr.mxu0 %v2667_v0 }
  0x15   :  { %2272 = vmatpush3.msra.mxu0 %v2801_v34 }
  0x16   :  { %2273 = vmatprep.subr.mxu0 %v2667_v0  ;;  %2250 = vmatmul.mubr.msk.f32.gmra.mxu0 %vm51_vm0, %v46_v35 }
  0x17   :  { %2274 = vmatpush3.msra.mxu0 %v2812_v36  ;;  %2279 = vmatprep.mubr.msk.f32.mxu0 %vm2668_vm1, %v2667_v0 }
  0x18   :  { %2275 = vmatprep.subr.mxu0 %v2667_v0 }
  0x19   :  { %2276 = vmatpush3.msra.mxu0 %v2820_v38 }
  0x1a   :  { %2277 = vmatprep.subr.mxu0 %v2667_v0 }
  0x1b   :  { %2278 = vmatpush3.msra.mxu0 %v2828_v39 }
  0x1c   :  { %2312 = vmatprep.subr.mxu0 %v2667_v0 }
  0xc5   :  { %v2740_v8 = vpop.f32.mrf.mxu0 }
  0xc6   :  { %v148_v49 = vadd.f32 %v2740_v8, %v2745_v9 }
  0xc7   :  { %v142_v10 = vpop.f32.mrf.mxu0 }
  0xc8   :  { %v143_v11 = vadd.f32 %v2745_v9, %v142_v10 }
  0xca   :  { %v251_v12 = vpop.f32.mrf.mxu1 }
  0xcb   :  { %v255_v13 = vadd.f32 %v251_v12, %v143_v11 }
  0xcc   :  { %v2262_v14 = vpop.f32.mrf.mxu1  ;;  %v2868_v44 = vpop.f32.mrf.mxu0 }
  0xcd   :  { %2525 = vtanh.f32 %v255_v13  ;;  %v2066_v16 = vmul.f32 -1.442695, %v255_v13 }
  0xce   :  { %v2870_v45 = vpop.f32.mrf.mxu0 }
  0xcf   :  { %2527 = vpow2.f32 %v2066_v16  ;;  %v153_v33 = vadd.f32 %v2745_v9, %v2870_v45 }
  0xd2   :  { %v2872_v46 = vpop.f32.mrf.mxu0 }
  0xd4   :  { %v2874_v47 = vpop.f32.mrf.mxu0 }
  0xd6   :  { %v2876_v48 = vpop.f32.mrf.mxu0 }
  0xd8   :  { %v2880_v50 = vpop.f32.mrf.mxu0 }
  0xda   :  { %v2526_v15 = vpop.eup %2525 }
  0xdb   :  { %265 = vrot.lane.b32.xlu0 %v2526_v15, %s2669_s25 }
  0xdc   :  { %v2528_v17 = vpop.eup %2527 }
  0xdd   :  { %v259_v18 = vadd.f32 1.0, %v2528_v17 }
  0xdf   :  { %2529 = vrcp.f32 %v259_v18 }
  0xec   :  { %v2530_v19 = vpop.eup %2529 }
  0xed   :  { %v263_v22 = vmul.f32 0.0, %v2530_v19 }
 0x14d   :  { %v266_v20 = vpop.permute.xlu0 %265 }
 0x14e   :  { %v268_v21 = vmul.f32 %v2530_v19, %v266_v20 }
 0x150   :  { %270 = vrot.lane.b32.xlu0 %v268_v21, %s2670_s26 }
 0x1c2   :  { %v271_v23 = vpop.permute.xlu0 %270 }
 0x1c3   :  { %v2750_v24 = vadd.f32 %v271_v23, %v263_v22 }
 0x1c5   :  { %2531 = vtanh.f32 %v2750_v24 }
 0x1d2   :  { %v2532_v37 = vpop.eup %2531 }
 0x1d3   :  { %276 = vrot.lane.b32.xlu1 %v2532_v37, %s2669_s25 }
 0x245   :  { %v277_v40 = vpop.permute.xlu1 %276 }
 0x246   :  { %v279_v41 = vmul.f32 %v2530_v19, %v277_v40 }
 0x248   :  { %281 = vrot.lane.b32.xlu1 %v279_v41, %s2670_s26 }
 0x2ba   :  { %v282_v42 = vpop.permute.xlu1 %281 }
 0x2bb   :  { %v284_v43 = vsel %vm181_vm2, %v282_v42, 0.0  ;;  %2291 = vmatmul.mubr.msk.f32.vlgmr.msra.gmra.mxu1 %vm181_vm2, %v282_v42 }
 0x2bc   :  { %2280 = vmatmul.mubr.msk.f32.vlgmr.msra.gmra.mxu0 %vm289_vm3, %v284_v43  ;;  %2294 = vmatpush3.msra.mxu1 %v2756_v25 }
 0x2bd   :  { %2295 = vmatprep.subr.mxu1 %v2667_v0  ;;  %2313 = vmatpush3.msra.mxu0 %v2693_v2 }
 0x2be   :  { %2296 = vmatpush3.msra.mxu1 %v2769_v28  ;;  %2314 = vmatprep.subr.mxu0 %v2667_v0 }
 0x2bf   :  { %2297 = vmatprep.subr.mxu1 %v2667_v0  ;;  %2315 = vmatpush3.msra.mxu0 %v2707_v5 }
 0x2c0   :  { %2298 = vmatpush3.msra.mxu1 %v2779_v30  ;;  %2316 = vmatprep.subr.mxu0 %v2667_v0 }
 0x2c1   :  { %2299 = vmatprep.subr.mxu1 %v2667_v0  ;;  %2317 = vmatpush3.msra.mxu0 %v2715_v6 }
 0x2c2   :  { %2300 = vmatpush3.msra.mxu1 %v2790_v32  ;;  %2318 = vmatprep.subr.mxu0 %v2667_v0 }
 0x2c3   :  { %2301 = vmatprep.subr.mxu1 %v2667_v0  ;;  %2319 = vmatpush3.msra.mxu0 %v2723_v7 }
 0x2c4   :  { %2302 = vmatpush3.msra.mxu1 %v2801_v34  ;;  %2320 = vmatprep.mubr.msk.f32.mxu0 %vm2668_vm1, %v2667_v0 }
 0x2c5   :  { %2303 = vmatprep.subr.mxu1 %v2667_v0  ;;  %2309 = vmatprep.mubr.msk.f32.mxu1 %vm2668_vm1, %v2667_v0 }
 0x2c6   :  { %2304 = vmatpush3.msra.mxu1 %v2812_v36  ;;  %2323 = vmatprep.subr.mxu0 %v2667_v0 }
 0x2c7   :  { %2305 = vmatprep.subr.mxu1 %v2667_v0 }
 0x2c8   :  { %2306 = vmatpush3.msra.mxu1 %v2820_v38 }
 0x2c9   :  { %2307 = vmatprep.subr.mxu1 %v2667_v0 }
 0x2ca   :  { %2308 = vmatpush3.msra.mxu1 %v2828_v39 }
 0x2cb   :  { %2342 = vmatprep.subr.mxu1 %v2667_v0 }
 0x37b   :  { %v455_v52 = vpop.f32.mrf.mxu1 }
 0x37c   :  { %v459_v53 = vadd.f32 %v455_v52, %v148_v49  ;;  %v359_v54 = vpop.f32.mrf.mxu0 }
 0x37d   :  { %v360_v55 = vadd.f32 %v2885_v51, %v359_v54  ;;  %v2292_v56 = vpop.f32.mrf.mxu1 }
 0x37e   :  { %2533 = vtanh.f32 %v459_v53  ;;  %v2281_v57 = vpop.f32.mrf.mxu0  ;;  %v2071_v60 = vmul.f32 -1.442695, %v459_v53 }
 0x37f   :  { %2535 = vtanh.f32 %v360_v55  ;;  %v2069_v61 = vmul.f32 -1.442695, %v360_v55 }
 0x380   :  { %2537 = vpow2.f32 %v2071_v60 }
 0x381   :  { %2539 = vpow2.f32 %v2069_v61 }
 0x38b   :  { %v2534_v58 = vpop.eup %2533 }
 0x38c   :  { %v2536_v59 = vpop.eup %2535  ;;  %469 = vrot.lane.b32.xlu1 %v2534_v58, %s2669_s25 }
 0x38d   :  { %372 = vrot.lane.b32.xlu0 %v2536_v59, %s2669_s25  ;;  %v2538_v62 = vpop.eup %2537 }
 0x38e   :  { %v2540_v63 = vpop.eup %2539  ;;  %v463_v1 = vadd.f32 1.0, %v2538_v62 }
 0x38f   :  { %v366_v3 = vadd.f32 1.0, %v2540_v63 }
 0x390   :  { %2541 = vrcp.f32 %v463_v1 }
 0x391   :  { %2543 = vrcp.f32 %v366_v3 }
 0x39d   :  { %v2542_v4 = vpop.eup %2541 }
 0x39e   :  { %v2544_v10 = vpop.eup %2543  ;;  %v467_v14 = vmul.f32 %v2542_v4, %v2750_v24 }
 0x39f   :  { %v370_v16 = vmul.f32 0.0, %v2544_v10 }
 0x3fe   :  { %v470_v8 = vpop.permute.xlu1 %469 }
 0x3ff   :  { %v472_v11 = vmul.f32 %v2542_v4, %v470_v8  ;;  %v373_v12 = vpop.permute.xlu0 %372 }
 0x400   :  { %v375_v13 = vmul.f32 %v2544_v10, %v373_v12 }
 0x401   :  { %474 = vrot.lane.b32.xlu1 %v472_v11, %s2670_s26 }
 0x402   :  { %377 = vrot.lane.b32.xlu0 %v375_v13, %s2670_s26 }
 0x473   :  { %v475_v15 = vpop.permute.xlu1 %474 }
 0x474   :  { %v2893_v17 = vadd.f32 %v475_v15, %v467_v14  ;;  %v378_v18 = vpop.permute.xlu0 %377 }
 0x475   :  { %v2895_v19 = vadd.f32 %v378_v18, %v370_v16 }
 0x476   :  { %2545 = vtanh.f32 %v2893_v17 }
 0x477   :  { %2547 = vtanh.f32 %v2895_v19 }
 0x483   :  { %v2546_v20 = vpop.eup %2545 }
 0x484   :  { %v2548_v21 = vpop.eup %2547  ;;  %480 = vrot.lane.b32.xlu1 %v2546_v20, %s2669_s25 }
 0x485   :  { %383 = vrot.lane.b32.xlu0 %v2548_v21, %s2669_s25  ;;  %v158_v21 = vadd.f32 %v2868_v44, %v2745_v9 }
 0x4f6   :  { %v481_v22 = vpop.permute.xlu1 %480 }
 0x4f7   :  { %v483_v23 = vmul.f32 %v2542_v4, %v481_v22  ;;  %v384_v24 = vpop.permute.xlu0 %383 }
 0x4f8   :  { %v386_v26 = vmul.f32 %v2544_v10, %v384_v24 }
 0x4f9   :  { %485 = vrot.lane.b32.xlu0 %v483_v23, %s2670_s26 }
 0x4fa   :  { %489 = vrot.lane.b32.xlu1 %v386_v26, %s2669_s25 }
 0x56b   :  { %v486_v27 = vpop.permute.xlu0 %485 }
 0x56c   :  { %v490_v29 = vpop.permute.xlu1 %489  ;;  %2321 = vmatmul.mubr.msk.f32.vlgmr.msra.gmra.mxu0 %vm181_vm2, %v486_v27 }
 0x56d   :  { %v492_v31 = vsel %vm181_vm2, %v486_v27, %v490_v29  ;;  %2324 = vmatpush3.msra.mxu0 %v2756_v25  ;;  %2339 = vmatprep.mubr.msk.f32.mxu0 %vm2668_vm1, %v2667_v0 }
 0x56e   :  { %2310 = vmatmul.mubr.msk.f32.vlgmr.msra.gmra.mxu1 %vm289_vm3, %v492_v31  ;;  %2325 = vmatprep.subr.mxu0 %v2667_v0 }
 0x56f   :  { %2326 = vmatpush3.msra.mxu0 %v2769_v28  ;;  %2343 = vmatpush3.msra.mxu1 %v2693_v2 }
 0x570   :  { %2327 = vmatprep.subr.mxu0 %v2667_v0  ;;  %2344 = vmatprep.subr.mxu1 %v2667_v0 }
 0x571   :  { %2328 = vmatpush3.msra.mxu0 %v2779_v30  ;;  %2345 = vmatpush3.msra.mxu1 %v2707_v5 }
 0x572   :  { %2329 = vmatprep.subr.mxu0 %v2667_v0  ;;  %2346 = vmatprep.subr.mxu1 %v2667_v0 }
 0x573   :  { %2330 = vmatpush3.msra.mxu0 %v2790_v32  ;;  %2347 = vmatpush3.msra.mxu1 %v2715_v6 }
 0x574   :  { %2331 = vmatprep.subr.mxu0 %v2667_v0  ;;  %2348 = vmatprep.subr.mxu1 %v2667_v0 }
 0x575   :  { %2332 = vmatpush3.msra.mxu0 %v2801_v34  ;;  %2349 = vmatpush3.msra.mxu1 %v2723_v7 }
 0x576   :  { %2333 = vmatprep.subr.mxu0 %v2667_v0  ;;  %2350 = vmatprep.mubr.msk.f32.mxu1 %vm2668_vm1, %v2667_v0 }
 0x577   :  { %2334 = vmatpush3.msra.mxu0 %v2812_v36  ;;  %2353 = vmatprep.subr.mxu1 %v2667_v0 }
 0x578   :  { %2335 = vmatprep.subr.mxu0 %v2667_v0 }
 0x579   :  { %2336 = vmatpush3.msra.mxu0 %v2820_v38 }
 0x57a   :  { %2337 = vmatprep.subr.mxu0 %v2667_v0 }
 0x57b   :  { %2338 = vmatpush3.msra.mxu0 %v2828_v39 }
 0x57c   :  { %2372 = vmatprep.subr.mxu0 %v2667_v0 }
 0x62c   :  { %v658_v35 = vpop.f32.mrf.mxu0 }
 0x62d   :  { %v662_v37 = vadd.f32 %v658_v35, %v153_v33 }
 0x62e   :  { %v562_v40 = vpop.f32.mrf.mxu1  ;;  %v2322_v41 = vpop.f32.mrf.mxu0 }
 0x62f   :  { %2549 = vtanh.f32 %v662_v37  ;;  %v563_v42 = vadd.f32 %v2885_v51, %v562_v40  ;;  %v2075_v53 = vmul.f32 -1.442695, %v662_v37 }
 0x630   :  { %v2311_v43 = vpop.f32.mrf.mxu1 }
 0x631   :  { %2551 = vtanh.f32 %v563_v42  ;;  %v2073_v54 = vmul.f32 -1.442695, %v563_v42 }
 0x632   :  { %2553 = vpow2.f32 %v2075_v53 }
 0x633   :  { %2555 = vpow2.f32 %v2073_v54 }
 0x63c   :  { %v2550_v49 = vpop.eup %2549 }
 0x63d   :  { %672 = vrot.lane.b32.xlu1 %v2550_v49, %s2669_s25 }
 0x63e   :  { %v2552_v52 = vpop.eup %2551 }
 0x63f   :  { %575 = vrot.lane.b32.xlu0 %v2552_v52, %s2669_s25  ;;  %v2554_v45 = vpop.eup %2553 }
 0x640   :  { %v2556_v55 = vpop.eup %2555  ;;  %v666_v56 = vadd.f32 1.0, %v2554_v45 }
 0x641   :  { %v569_v57 = vadd.f32 1.0, %v2556_v55 }
 0x642   :  { %2557 = vrcp.f32 %v666_v56 }
 0x643   :  { %2559 = vrcp.f32 %v569_v57 }
 0x64f   :  { %v2558_v58 = vpop.eup %2557 }
 0x650   :  { %v2560_v61 = vpop.eup %2559  ;;  %v670_v1 = vmul.f32 %v2558_v58, %v2893_v17 }
 0x651   :  { %v573_v8 = vmul.f32 %v2560_v61, %v2895_v19 }
 0x6af   :  { %v673_v59 = vpop.permute.xlu1 %672 }
 0x6b0   :  { %v675_v60 = vmul.f32 %v2558_v58, %v673_v59 }
 0x6b1   :  { %v576_v62 = vpop.permute.xlu0 %575 }
 0x6b2   :  { %677 = vrot.lane.b32.xlu1 %v675_v60, %s2670_s26  ;;  %v578_v63 = vmul.f32 %v2560_v61, %v576_v62 }
 0x6b4   :  { %580 = vrot.lane.b32.xlu0 %v578_v63, %s2670_s26 }
 0x724   :  { %v678_v3 = vpop.permute.xlu1 %677 }
 0x725   :  { %v2942_v4 = vadd.f32 %v678_v3, %v670_v1 }
 0x726   :  { %v581_v10 = vpop.permute.xlu0 %580 }
 0x727   :  { %2561 = vtanh.f32 %v2942_v4  ;;  %v2946_v11 = vadd.f32 %v581_v10, %v573_v8 }
 0x729   :  { %2563 = vtanh.f32 %v2946_v11 }
 0x734   :  { %v2562_v12 = vpop.eup %2561 }
 0x735   :  { %683 = vrot.lane.b32.xlu1 %v2562_v12, %s2669_s25  ;;  %v163_v12 = vadd.f32 %v2745_v9, %v2874_v47 }
 0x736   :  { %v2564_v13 = vpop.eup %2563 }
 0x737   :  { %586 = vrot.lane.b32.xlu0 %v2564_v13, %s2669_s25 }
 0x7a7   :  { %v684_v14 = vpop.permute.xlu1 %683 }
 0x7a8   :  { %v686_v15 = vmul.f32 %v2558_v58, %v684_v14 }
 0x7a9   :  { %v587_v16 = vpop.permute.xlu0 %586 }
 0x7aa   :  { %688 = vrot.lane.b32.xlu0 %v686_v15, %s2670_s26  ;;  %v589_v17 = vmul.f32 %v2560_v61, %v587_v16 }
 0x7ac   :  { %692 = vrot.lane.b32.xlu1 %v589_v17, %s2669_s25 }
 0x81c   :  { %v689_v18 = vpop.permute.xlu0 %688 }
 0x81d   :  { %2351 = vmatmul.mubr.msk.f32.vlgmr.msra.gmra.mxu1 %vm181_vm2, %v689_v18 }
 0x81e   :  { %2354 = vmatpush3.msra.mxu1 %v2756_v25  ;;  %2369 = vmatprep.mubr.msk.f32.mxu1 %vm2668_vm1, %v2667_v0  ;;  %v693_v19 = vpop.permute.xlu1 %692 }
 0x81f   :  { %2355 = vmatprep.subr.mxu1 %v2667_v0  ;;  %v695_v20 = vsel %vm181_vm2, %v689_v18, %v693_v19 }
 0x820   :  { %2356 = vmatpush3.msra.mxu1 %v2769_v28  ;;  %2340 = vmatmul.mubr.msk.f32.vlgmr.msra.gmra.mxu0 %vm289_vm3, %v695_v20 }
 0x821   :  { %2357 = vmatprep.subr.mxu1 %v2667_v0  ;;  %2373 = vmatpush3.msra.mxu0 %v2693_v2 }
 0x822   :  { %2358 = vmatpush3.msra.mxu1 %v2779_v30  ;;  %2374 = vmatprep.subr.mxu0 %v2667_v0 }
 0x823   :  { %2359 = vmatprep.subr.mxu1 %v2667_v0  ;;  %2375 = vmatpush3.msra.mxu0 %v2707_v5 }
 0x824   :  { %2360 = vmatpush3.msra.mxu1 %v2790_v32  ;;  %2376 = vmatprep.subr.mxu0 %v2667_v0 }
 0x825   :  { %2361 = vmatprep.subr.mxu1 %v2667_v0  ;;  %2377 = vmatpush3.msra.mxu0 %v2715_v6 }
 0x826   :  { %2362 = vmatpush3.msra.mxu1 %v2801_v34  ;;  %2378 = vmatprep.subr.mxu0 %v2667_v0 }
 0x827   :  { %2363 = vmatprep.subr.mxu1 %v2667_v0  ;;  %2379 = vmatpush3.msra.mxu0 %v2723_v7 }
 0x828   :  { %2364 = vmatpush3.msra.mxu1 %v2812_v36  ;;  %2380 = vmatprep.mubr.msk.f32.mxu0 %vm2668_vm1, %v2667_v0 }
 0x829   :  { %2365 = vmatprep.subr.mxu1 %v2667_v0  ;;  %2383 = vmatprep.subr.mxu0 %v2667_v0 }
 0x82a   :  { %2366 = vmatpush3.msra.mxu1 %v2820_v38 }
 0x82b   :  { %2367 = vmatprep.subr.mxu1 %v2667_v0 }
 0x82c   :  { %2368 = vmatpush3.msra.mxu1 %v2828_v39 }
 0x82d   :  { %2402 = vmatprep.subr.mxu1 %v2667_v0 }
 0x8dd   :  { %v861_v22 = vpop.f32.mrf.mxu1 }
 0x8de   :  { %v865_v23 = vadd.f32 %v861_v22, %v158_v21 }
 0x8df   :  { %v2352_v24 = vpop.f32.mrf.mxu1 }
 0x8e0   :  { %2565 = vtanh.f32 %v865_v23  ;;  %v765_v26 = vpop.f32.mrf.mxu0  ;;  %v2079_v35 = vmul.f32 -1.442695, %v865_v23 }
 0x8e1   :  { %v766_v27 = vadd.f32 %v2885_v51, %v765_v26 }
 0x8e2   :  { %v2341_v29 = vpop.f32.mrf.mxu0 }
 0x8e3   :  { %2567 = vtanh.f32 %v766_v27  ;;  %v2077_v37 = vmul.f32 -1.442695, %v766_v27 }
 0x8e4   :  { %2569 = vpow2.f32 %v2079_v35 }
 0x8e5   :  { %2571 = vpow2.f32 %v2077_v37 }
 0x8ed   :  { %v2566_v31 = vpop.eup %2565 }
 0x8ee   :  { %875 = vrot.lane.b32.xlu1 %v2566_v31, %s2669_s25 }
 0x8f0   :  { %v2568_v33 = vpop.eup %2567 }
 0x8f1   :  { %778 = vrot.lane.b32.xlu0 %v2568_v33, %s2669_s25  ;;  %v2570_v44 = vpop.eup %2569 }
 0x8f2   :  { %v869_v40 = vadd.f32 1.0, %v2570_v44  ;;  %v2572_v41 = vpop.eup %2571 }
 0x8f3   :  { %v772_v42 = vadd.f32 1.0, %v2572_v41 }
 0x8f4   :  { %2573 = vrcp.f32 %v869_v40 }
 0x8f5   :  { %2575 = vrcp.f32 %v772_v42 }
 0x901   :  { %v2574_v43 = vpop.eup %2573 }
 0x902   :  { %v2576_v53 = vpop.eup %2575  ;;  %v873_v55 = vmul.f32 %v2574_v43, %v2942_v4 }
 0x903   :  { %v776_v58 = vmul.f32 %v2576_v53, %v2946_v11 }
 0x960   :  { %v876_v49 = vpop.permute.xlu1 %875 }
 0x961   :  { %v878_v52 = vmul.f32 %v2574_v43, %v876_v49 }
 0x963   :  { %880 = vrot.lane.b32.xlu1 %v878_v52, %s2670_s26  ;;  %v779_v54 = vpop.permute.xlu0 %778 }
 0x964   :  { %v781_v45 = vmul.f32 %v2576_v53, %v779_v54 }
 0x966   :  { %783 = vrot.lane.b32.xlu0 %v781_v45, %s2670_s26 }
 0x9d5   :  { %v881_v56 = vpop.permute.xlu1 %880 }
 0x9d6   :  { %v2992_v57 = vadd.f32 %v881_v56, %v873_v55 }
 0x9d8   :  { %2577 = vtanh.f32 %v2992_v57  ;;  %v784_v59 = vpop.permute.xlu0 %783 }
 0x9d9   :  { %v2996_v60 = vadd.f32 %v784_v59, %v776_v58 }
 0x9db   :  { %2579 = vtanh.f32 %v2996_v60 }
 0x9e5   :  { %v2578_v61 = vpop.eup %2577 }
 0x9e6   :  { %886 = vrot.lane.b32.xlu1 %v2578_v61, %s2669_s25 }
 0x9e8   :  { %v2580_v62 = vpop.eup %2579 }
 0x9e9   :  { %789 = vrot.lane.b32.xlu0 %v2580_v62, %s2669_s25 }
 0xa58   :  { %v887_v63 = vpop.permute.xlu1 %886 }
 0xa59   :  { %v889_v1 = vmul.f32 %v2574_v43, %v887_v63 }
 0xa5b   :  { %891 = vrot.lane.b32.xlu0 %v889_v1, %s2670_s26  ;;  %v790_v3 = vpop.permute.xlu0 %789 }
 0xa5c   :  { %v792_v4 = vmul.f32 %v2576_v53, %v790_v3 }
 0xa5e   :  { %895 = vrot.lane.b32.xlu1 %v792_v4, %s2669_s25 }
 0xacd   :  { %v892_v8 = vpop.permute.xlu0 %891 }
 0xace   :  { %2381 = vmatmul.mubr.msk.f32.vlgmr.msra.gmra.mxu0 %vm181_vm2, %v892_v8 }
 0xacf   :  { %2384 = vmatpush3.msra.mxu0 %v2756_v25  ;;  %2399 = vmatprep.mubr.msk.f32.mxu0 %vm2668_vm1, %v2667_v0 }
 0xad0   :  { %2385 = vmatprep.subr.mxu0 %v2667_v0  ;;  %v896_v10 = vpop.permute.xlu1 %895 }
 0xad1   :  { %2386 = vmatpush3.msra.mxu0 %v2769_v28  ;;  %v898_v11 = vsel %vm181_vm2, %v892_v8, %v896_v10 }
 0xad2   :  { %2387 = vmatprep.subr.mxu0 %v2667_v0  ;;  %2370 = vmatmul.mubr.msk.f32.vlgmr.msra.gmra.mxu1 %vm289_vm3, %v898_v11 }
 0xad3   :  { %2388 = vmatpush3.msra.mxu0 %v2779_v30  ;;  %2403 = vmatpush3.msra.mxu1 %v2693_v2 }
 0xad4   :  { %2389 = vmatprep.subr.mxu0 %v2667_v0  ;;  %2404 = vmatprep.subr.mxu1 %v2667_v0 }
 0xad5   :  { %2390 = vmatpush3.msra.mxu0 %v2790_v32  ;;  %2405 = vmatpush3.msra.mxu1 %v2707_v5 }
 0xad6   :  { %2391 = vmatprep.subr.mxu0 %v2667_v0  ;;  %2406 = vmatprep.subr.mxu1 %v2667_v0 }
 0xad7   :  { %2392 = vmatpush3.msra.mxu0 %v2801_v34  ;;  %2407 = vmatpush3.msra.mxu1 %v2715_v6 }
 0xad8   :  { %2393 = vmatprep.subr.mxu0 %v2667_v0  ;;  %2408 = vmatprep.subr.mxu1 %v2667_v0 }
 0xad9   :  { %2410 = vmatprep.mubr.msk.f32.mxu1 %vm2668_vm1, %v2667_v0  ;;  %2409 = vmatpush3.msra.mxu1 %v2723_v7 }
 0xada   :  { %2394 = vmatpush3.msra.mxu0 %v2812_v36  ;;  %2413 = vmatprep.subr.mxu1 %v2667_v0 }
 0xadb   :  { %2395 = vmatprep.subr.mxu0 %v2667_v0 }
 0xadc   :  { %2396 = vmatpush3.msra.mxu0 %v2820_v38 }
 0xadd   :  { %2397 = vmatprep.subr.mxu0 %v2667_v0 }
 0xade   :  { %2398 = vmatpush3.msra.mxu0 %v2828_v39 }
 0xadf   :  { %2432 = vmatprep.subr.mxu0 %v2667_v0 }
 0xb8e   :  { %v1064_v13 = vpop.f32.mrf.mxu0 }
 0xb8f   :  { %v1068_v14 = vadd.f32 %v1064_v13, %v163_v12 }
 0xb90   :  { %v2382_v15 = vpop.f32.mrf.mxu0 }
 0xb91   :  { %2581 = vtanh.f32 %v1068_v14  ;;  %v2083_v21 = vmul.f32 -1.442695, %v1068_v14 }
 0xb92   :  { %v968_v16 = vpop.f32.mrf.mxu1 }
 0xb93   :  { %v969_v17 = vadd.f32 %v2885_v51, %v968_v16 }
 0xb94   :  { %v2371_v18 = vpop.f32.mrf.mxu1 }
 0xb95   :  { %2583 = vtanh.f32 %v969_v17  ;;  %v2081_v22 = vmul.f32 -1.442695, %v969_v17 }
 0xb96   :  { %2585 = vpow2.f32 %v2083_v21 }
 0xb97   :  { %2587 = vpow2.f32 %v2081_v22 }
 0xb9e   :  { %v2582_v19 = vpop.eup %2581 }
 0xb9f   :  { %1078 = vrot.lane.b32.xlu1 %v2582_v19, %s2669_s25 }
 0xba2   :  { %v2584_v20 = vpop.eup %2583 }
 0xba3   :  { %981 = vrot.lane.b32.xlu0 %v2584_v20, %s2669_s25  ;;  %v2586_v47 = vpop.eup %2585 }
 0xba4   :  { %v1072_v23 = vadd.f32 1.0, %v2586_v47  ;;  %v2588_v24 = vpop.eup %2587 }
 0xba5   :  { %v975_v26 = vadd.f32 1.0, %v2588_v24 }
 0xba6   :  { %2589 = vrcp.f32 %v1072_v23 }
 0xba7   :  { %2591 = vrcp.f32 %v975_v26 }
 0xbb3   :  { %v2590_v27 = vpop.eup %2589 }
 0xbb4   :  { %v2592_v33 = vpop.eup %2591  ;;  %v1076_v44 = vmul.f32 %v2590_v27, %v2992_v57 }
 0xbb5   :  { %v979_v42 = vmul.f32 %v2592_v33, %v2996_v60 }
 0xc11   :  { %v1079_v29 = vpop.permute.xlu1 %1078 }
 0xc12   :  { %v1081_v31 = vmul.f32 %v2590_v27, %v1079_v29 }
 0xc14   :  { %1083 = vrot.lane.b32.xlu1 %v1081_v31, %s2670_s26 }
 0xc15   :  { %v982_v35 = vpop.permute.xlu0 %981 }
 0xc16   :  { %v984_v37 = vmul.f32 %v2592_v33, %v982_v35 }
 0xc18   :  { %986 = vrot.lane.b32.xlu0 %v984_v37, %s2670_s26 }
 0xc86   :  { %v1084_v40 = vpop.permute.xlu1 %1083 }
 0xc87   :  { %v3042_v41 = vadd.f32 %v1084_v40, %v1076_v44 }
 0xc89   :  { %2593 = vtanh.f32 %v3042_v41 }
 0xc8a   :  { %v987_v43 = vpop.permute.xlu0 %986 }
 0xc8b   :  { %v3046_v49 = vadd.f32 %v987_v43, %v979_v42 }
 0xc8d   :  { %2595 = vtanh.f32 %v3046_v49 }
 0xc96   :  { %v2594_v52 = vpop.eup %2593 }
 0xc97   :  { %1089 = vrot.lane.b32.xlu1 %v2594_v52, %s2669_s25 }
 0xc9a   :  { %v2596_v53 = vpop.eup %2595 }
 0xc9b   :  { %992 = vrot.lane.b32.xlu0 %v2596_v53, %s2669_s25 }
 0xd09   :  { %v1090_v54 = vpop.permute.xlu1 %1089 }
 0xd0a   :  { %v1092_v45 = vmul.f32 %v2590_v27, %v1090_v54 }
 0xd0c   :  { %1094 = vrot.lane.b32.xlu0 %v1092_v45, %s2670_s26 }
 0xd0d   :  { %v993_v55 = vpop.permute.xlu0 %992 }
 0xd0e   :  { %v995_v56 = vmul.f32 %v2592_v33, %v993_v55 }
 0xd10   :  { %1098 = vrot.lane.b32.xlu1 %v995_v56, %s2669_s25 }
 0xd7e   :  { %v1095_v57 = vpop.permute.xlu0 %1094 }
 0xd7f   :  { %2411 = vmatmul.mubr.msk.f32.vlgmr.msra.gmra.mxu1 %vm181_vm2, %v1095_v57 }
 0xd80   :  { %2414 = vmatpush3.msra.mxu1 %v2756_v25  ;;  %2429 = vmatprep.mubr.msk.f32.mxu1 %vm2668_vm1, %v2667_v0 }
 0xd81   :  { %2415 = vmatprep.subr.mxu1 %v2667_v0 }
 0xd82   :  { %2416 = vmatpush3.msra.mxu1 %v2769_v28  ;;  %v1099_v58 = vpop.permute.xlu1 %1098 }
 0xd83   :  { %2417 = vmatprep.subr.mxu1 %v2667_v0  ;;  %v1101_v59 = vsel %vm181_vm2, %v1095_v57, %v1099_v58 }
 0xd84   :  { %2418 = vmatpush3.msra.mxu1 %v2779_v30  ;;  %2400 = vmatmul.mubr.msk.f32.vlgmr.msra.gmra.mxu0 %vm289_vm3, %v1101_v59 }
 0xd85   :  { %2419 = vmatprep.subr.mxu1 %v2667_v0  ;;  %2433 = vmatpush3.msra.mxu0 %v2693_v2  ;;  %v168_v2 = vadd.f32 %v2872_v46, %v2745_v9 }
 0xd86   :  { %2420 = vmatpush3.msra.mxu1 %v2790_v32  ;;  %2434 = vmatprep.subr.mxu0 %v2667_v0 }
 0xd87   :  { %2421 = vmatprep.subr.mxu1 %v2667_v0  ;;  %2435 = vmatpush3.msra.mxu0 %v2707_v5 }
 0xd88   :  { %2422 = vmatpush3.msra.mxu1 %v2801_v34  ;;  %2436 = vmatprep.subr.mxu0 %v2667_v0 }
 0xd89   :  { %2440 = vmatprep.mubr.msk.f32.mxu0 %vm2668_vm1, %v2667_v0  ;;  %2437 = vmatpush3.msra.mxu0 %v2715_v6 }
 0xd8a   :  { %2423 = vmatprep.subr.mxu1 %v2667_v0  ;;  %2438 = vmatprep.subr.mxu0 %v2667_v0 }
 0xd8b   :  { %2424 = vmatpush3.msra.mxu1 %v2812_v36  ;;  %2439 = vmatpush3.msra.mxu0 %v2723_v7 }
 0xd8c   :  { %2425 = vmatprep.subr.mxu1 %v2667_v0  ;;  %2443 = vmatprep.subr.mxu0 %v2667_v0 }
 0xd8d   :  { %2426 = vmatpush3.msra.mxu1 %v2820_v38 }
 0xd8e   :  { %2427 = vmatprep.subr.mxu1 %v2667_v0 }
 0xd8f   :  { %2428 = vmatpush3.msra.mxu1 %v2828_v39 }
 0xd90   :  { %2462 = vmatprep.subr.mxu1 %v2667_v0 }
 0xe3f   :  { %v1267_v5 = vpop.f32.mrf.mxu1 }
 0xe40   :  { %v1271_v6 = vadd.f32 %v1267_v5, %v168_v2 }
 0xe41   :  { %v2412_v60 = vpop.f32.mrf.mxu1 }
 0xe42   :  { %2597 = vtanh.f32 %v1271_v6  ;;  %v2087_v3 = vmul.f32 -1.442695, %v1271_v6 }
 0xe44   :  { %v1171_v7 = vpop.f32.mrf.mxu0 }
 0xe45   :  { %v1172_v61 = vadd.f32 %v2885_v51, %v1171_v7 }
 0xe46   :  { %v2401_v62 = vpop.f32.mrf.mxu0 }
 0xe47   :  { %2599 = vtanh.f32 %v1172_v61  ;;  %v2085_v4 = vmul.f32 -1.442695, %v1172_v61 }
 0xe48   :  { %2601 = vpow2.f32 %v2087_v3 }
 0xe49   :  { %2603 = vpow2.f32 %v2085_v4 }
 0xe4f   :  { %v2598_v63 = vpop.eup %2597 }
 0xe50   :  { %1281 = vrot.lane.b32.xlu1 %v2598_v63, %s2669_s25 }
 0xe54   :  { %v2600_v1 = vpop.eup %2599 }
 0xe55   :  { %1184 = vrot.lane.b32.xlu0 %v2600_v1, %s2669_s25  ;;  %v2602_v46 = vpop.eup %2601 }
 0xe56   :  { %v1275_v8 = vadd.f32 1.0, %v2602_v46  ;;  %v2604_v10 = vpop.eup %2603 }
 0xe57   :  { %v1178_v11 = vadd.f32 1.0, %v2604_v10  ;;  %v2657_v10 = vld [vmem:[%s3282_s1 + $0x60] sm:$0xff] }
 0xe58   :  { %2605 = vrcp.f32 %v1275_v8 }
 0xe59   :  { %2607 = vrcp.f32 %v1178_v11  ;;  %v2658_v11 = vld [vmem:[%s3282_s1 + $0x58] sm:$0xff] }
 0xe65   :  { %v2606_v12 = vpop.eup %2605 }
 0xe66   :  { %v2608_v15 = vpop.eup %2607  ;;  %v1279_v18 = vmul.f32 %v2606_v12, %v3042_v41 }
 0xe67   :  { %v1182_v21 = vmul.f32 %v2608_v15, %v3046_v49 }
 0xec2   :  { %v1282_v13 = vpop.permute.xlu1 %1281 }
 0xec3   :  { %v1284_v14 = vmul.f32 %v2606_v12, %v1282_v13 }
 0xec5   :  { %1286 = vrot.lane.b32.xlu1 %v1284_v14, %s2670_s26 }
 0xec7   :  { %v1185_v16 = vpop.permute.xlu0 %1184 }
 0xec8   :  { %v1187_v17 = vmul.f32 %v2608_v15, %v1185_v16  ;;  %v2661_v16 = vld [vmem:[%s3282_s1 + $0x40] sm:$0xff] }
 0xeca   :  { %1189 = vrot.lane.b32.xlu0 %v1187_v17, %s2670_s26  ;;  %v2662_v17 = vld [vmem:[%s3282_s1 + $0x38] sm:$0xff] }
 0xf37   :  { %v1287_v19 = vpop.permute.xlu1 %1286 }
 0xf38   :  { %v3092_v20 = vadd.f32 %v1287_v19, %v1279_v18  ;;  %v2663_v18 = vld [vmem:[%s3282_s1 + $0x30] sm:$0xff]  ;;  %v2664_v19 = vld [vmem:[%s3282_s1 + $0x28] sm:$0xff] }
 0xf3a   :  { %2609 = vtanh.f32 %v3092_v20 }
 0xf3c   :  { %v1190_v22 = vpop.permute.xlu0 %1189 }
 0xf3d   :  { %v3096_v47 = vadd.f32 %v1190_v22, %v1182_v21 }
 0xf3f   :  { %2611 = vtanh.f32 %v3096_v47 }
 0xf47   :  { %v2610_v23 = vpop.eup %2609 }
 0xf48   :  { %1292 = vrot.lane.b32.xlu1 %v2610_v23, %s2669_s25 }
 0xf4c   :  { %v2612_v24 = vpop.eup %2611 }
 0xf4d   :  { %1195 = vrot.lane.b32.xlu0 %v2612_v24, %s2669_s25 }
 0xfba   :  { %v1293_v26 = vpop.permute.xlu1 %1292 }
 0xfbb   :  { %v1295_v27 = vmul.f32 %v2606_v12, %v1293_v26  ;;  %v2659_v12 = vld [vmem:[%s3282_s1 + $0x50] sm:$0xff] }
 0xfbd   :  { %1297 = vrot.lane.b32.xlu0 %v1295_v27, %s2670_s26 }
 0xfbf   :  { %v1196_v29 = vpop.permute.xlu0 %1195 }
 0xfc0   :  { %v1198_v31 = vmul.f32 %v2608_v15, %v1196_v29  ;;  %v2660_v15 = vld [vmem:[%s3282_s1 + $0x48] sm:$0xff] }
 0xfc2   :  { %1301 = vrot.lane.b32.xlu1 %v1198_v31, %s2669_s25 }
0x102f   :  { %v1298_v33 = vpop.permute.xlu0 %1297 }
0x1030   :  { %2441 = vmatmul.mubr.msk.f32.vlgmr.msra.gmra.mxu0 %vm181_vm2, %v1298_v33 }
0x1031   :  { %2444 = vmatpush3.msra.mxu0 %v2756_v25  ;;  %2459 = vmatprep.mubr.msk.f32.mxu0 %vm2668_vm1, %v2667_v0  ;;  %v2653_v25 = vld [vmem:[%s3282_s1 + $0x20] sm:$0xff] }
0x1032   :  { %2445 = vmatprep.subr.mxu0 %v2667_v0 }
0x1033   :  { %2446 = vmatpush3.msra.mxu0 %v2769_v28  ;;  %v2654_v28 = vld [vmem:[%s3282_s1 + $0x18] sm:$0xff] }
0x1034   :  { %2447 = vmatprep.subr.mxu0 %v2667_v0  ;;  %v1302_v35 = vpop.permute.xlu1 %1301 }
0x1035   :  { %2448 = vmatpush3.msra.mxu0 %v2779_v30  ;;  %v1304_v37 = vsel %vm181_vm2, %v1298_v33, %v1302_v35  ;;  %v2655_v30 = vld [vmem:[%s3282_s1 + $0x10] sm:$0xff] }
0x1036   :  { %2449 = vmatprep.subr.mxu0 %v2667_v0  ;;  %2430 = vmatmul.mubr.msk.f32.vlgmr.msra.gmra.mxu1 %vm289_vm3, %v1304_v37 }
0x1037   :  { %2450 = vmatpush3.msra.mxu0 %v2790_v32  ;;  %2463 = vmatpush3.msra.mxu1 %v2653_v25  ;;  %v2656_v32 = vld [vmem:[%s3282_s1 + $0x8] sm:$0xff] }
0x1038   :  { %2451 = vmatprep.subr.mxu0 %v2667_v0  ;;  %2464 = vmatprep.subr.mxu1 %v2667_v0 }
0x1039   :  { %2470 = vmatprep.mubr.msk.f32.mxu1 %vm2668_vm1, %v2667_v0  ;;  %2465 = vmatpush3.msra.mxu1 %v2654_v28 }
0x103a   :  { %2452 = vmatpush3.msra.mxu0 %v2801_v34  ;;  %2466 = vmatprep.subr.mxu1 %v2667_v0  ;;  %v173_v34 = vadd.f32 %v2745_v9, %v2880_v50 }
0x103b   :  { %2453 = vmatprep.subr.mxu0 %v2667_v0  ;;  %2467 = vmatpush3.msra.mxu1 %v2655_v30 }
0x103c   :  { %2454 = vmatpush3.msra.mxu0 %v2812_v36  ;;  %2468 = vmatprep.subr.mxu1 %v2667_v0 }
0x103d   :  { %2455 = vmatprep.subr.mxu0 %v2667_v0  ;;  %2469 = vmatpush3.msra.mxu1 %v2656_v32 }
0x103e   :  { %2456 = vmatpush3.msra.mxu0 %v2820_v38  ;;  %2473 = vmatprep.subr.mxu1 %v2667_v0 }
0x103f   :  { %2457 = vmatprep.subr.mxu0 %v2667_v0 }
0x1040   :  { %2458 = vmatpush3.msra.mxu0 %v2828_v39 }
0x1041   :  { %2492 = vmatprep.subr.mxu0 %v2667_v0 }
0x10f0   :  { %v1470_v36 = vpop.f32.mrf.mxu0 }
0x10f1   :  { %v1474_v44 = vadd.f32 %v1470_v36, %v173_v34 }
0x10f2   :  { %v2442_v40 = vpop.f32.mrf.mxu0 }
0x10f3   :  { %2613 = vtanh.f32 %v1474_v44  ;;  %v2091_v39 = vmul.f32 -1.442695, %v1474_v44 }
0x10f6   :  { %v1374_v41 = vpop.f32.mrf.mxu1 }
0x10f7   :  { %v1375_v42 = vadd.f32 %v2885_v51, %v1374_v41 }
0x10f8   :  { %v2431_v43 = vpop.f32.mrf.mxu1 }
0x10f9   :  { %2615 = vtanh.f32 %v1375_v42  ;;  %v2089_v52 = vmul.f32 -1.442695, %v1375_v42 }
0x10fa   :  { %2617 = vpow2.f32 %v2091_v39 }
0x10fb   :  { %2619 = vpow2.f32 %v2089_v52 }
0x1100   :  { %v2614_v38 = vpop.eup %2613 }
0x1101   :  { %1484 = vrot.lane.b32.xlu1 %v2614_v38, %s2669_s25 }
0x1106   :  { %v2616_v49 = vpop.eup %2615 }
0x1107   :  { %1387 = vrot.lane.b32.xlu0 %v2616_v49, %s2669_s25  ;;  %v2618_v9 = vpop.eup %2617 }
0x1108   :  { %v1478_v50 = vadd.f32 1.0, %v2618_v9  ;;  %v2620_v53 = vpop.eup %2619 }
0x1109   :  { %v1381_v54 = vadd.f32 1.0, %v2620_v53 }
0x110a   :  { %2621 = vrcp.f32 %v1478_v50 }
0x110b   :  { %2623 = vrcp.f32 %v1381_v54 }
0x1117   :  { %v2622_v45 = vpop.eup %2621 }
0x1118   :  { %v2624_v57 = vpop.eup %2623  ;;  %v1482_v2 = vmul.f32 %v2622_v45, %v3092_v20  ;;  %v2665_v20 = vld [vmem:[%s3282_s1 + $0xb8] ss:$0 sm:$0xff] }
0x1119   :  { %v1385_v60 = vmul.f32 %v2624_v57, %v3096_v47  ;;  %v178_v21 = vadd.f32 %v2665_v20, %v2876_v48  ;;  %v2098_v20 = vld [vmem:[%s3282_s1 + $0xba] ss:$0 sm:$0xff] }
0x1173   :  { %v1485_v55 = vpop.permute.xlu1 %1484 }
0x1174   :  { %v1487_v56 = vmul.f32 %v2622_v45, %v1485_v55 }
0x1176   :  { %1489 = vrot.lane.b32.xlu1 %v1487_v56, %s2670_s26 }
0x1179   :  { %v1388_v58 = vpop.permute.xlu0 %1387 }
0x117a   :  { %v1390_v59 = vmul.f32 %v2624_v57, %v1388_v58  ;;  %v2666_v58 = vld [vmem:[%s3282_s1 + $0xb9] ss:$0 sm:$0xff] }
0x117c   :  { %1392 = vrot.lane.b32.xlu0 %v1390_v59, %s2670_s26 }
0x11e8   :  { %v1490_v5 = vpop.permute.xlu1 %1489 }
0x11e9   :  { %v3150_v6 = vadd.f32 %v1490_v5, %v1482_v2 }
0x11eb   :  { %2625 = vtanh.f32 %v3150_v6 }
0x11ee   :  { %v1393_v7 = vpop.permute.xlu0 %1392 }
0x11ef   :  { %v3154_v61 = vadd.f32 %v1393_v7, %v1385_v60 }
0x11f1   :  { %2627 = vtanh.f32 %v3154_v61 }
0x11f8   :  { %v2626_v62 = vpop.eup %2625 }
0x11f9   :  { %1495 = vrot.lane.b32.xlu1 %v2626_v62, %s2669_s25 }
0x11fe   :  { %v2628_v63 = vpop.eup %2627 }
0x11ff   :  { %1398 = vrot.lane.b32.xlu0 %v2628_v63, %s2669_s25 }
0x126b   :  { %v1496_v1 = vpop.permute.xlu1 %1495 }
0x126c   :  { %v1498_v3 = vmul.f32 %v2622_v45, %v1496_v1 }
0x126e   :  { %1500 = vrot.lane.b32.xlu0 %v1498_v3, %s2670_s26 }
0x1271   :  { %v1399_v4 = vpop.permute.xlu0 %1398 }
0x1272   :  { %v1401_v46 = vmul.f32 %v2624_v57, %v1399_v4 }
0x1274   :  { %1504 = vrot.lane.b32.xlu1 %v1401_v46, %s2669_s25  ;;  %v27_v46 = vld [vmem:[%s3282_s1 + $0x80] sm:$0xff] }
0x12e0   :  { %v1501_v8 = vpop.permute.xlu0 %1500 }
0x12e1   :  { %2471 = vmatmul.mubr.msk.f32.vlgmr.msra.gmra.mxu1 %vm181_vm2, %v1501_v8 }
0x12e2   :  { %2474 = vmatpush3.msra.mxu1 %v2657_v10  ;;  %2489 = vmatprep.mubr.msk.f32.mxu1 %vm2668_vm1, %v2667_v0  ;;  %v25_v10 = vld [vmem:[%s3282_s1 + $0x70] sm:$0xff] }
0x12e3   :  { %2475 = vmatprep.subr.mxu1 %v2667_v0 }
0x12e4   :  { %2476 = vmatpush3.msra.mxu1 %v2658_v11  ;;  %v24_v11 = vld [vmem:[%s3282_s1 + $0x68] sm:$0xff] }
0x12e5   :  { %2477 = vmatprep.subr.mxu1 %v2667_v0 }
0x12e6   :  { %2478 = vmatpush3.msra.mxu1 %v2659_v12  ;;  %v1505_v13 = vpop.permute.xlu1 %1504 }
0x12e7   :  { %2479 = vmatprep.subr.mxu1 %v2667_v0  ;;  %v1507_v14 = vsel %vm181_vm2, %v1501_v8, %v1505_v13  ;;  %v26_v8 = vld [vmem:[%s3282_s1 + $0x78] sm:$0xff] }
0x12e8   :  { %2480 = vmatpush3.msra.mxu1 %v2660_v15  ;;  %2460 = vmatmul.mubr.msk.f32.vlgmr.msra.gmra.mxu0 %vm289_vm3, %v1507_v14  ;;  %v31_v15 = vld [vmem:[%s3282_s1 + $0xa0] sm:$0xff] }
0x12e9   :  { %2481 = vmatprep.subr.mxu1 %v2667_v0  ;;  %2500 = vmatprep.mubr.msk.f32.mxu0 %vm2668_vm1, %v2667_v0 }
0x12ea   :  { %2482 = vmatpush3.msra.mxu1 %v2661_v16  ;;  %2493 = vmatpush3.msra.mxu0 %v27_v46 }
0x12eb   :  { %2483 = vmatprep.subr.mxu1 %v2667_v0  ;;  %2494 = vmatprep.subr.mxu0 %v2667_v0 }
0x12ec   :  { %2484 = vmatpush3.msra.mxu1 %v2662_v17  ;;  %2495 = vmatpush3.msra.mxu0 %v26_v8  ;;  %v30_v17 = vld [vmem:[%s3282_s1 + $0x98] sm:$0xff] }
0x12ed   :  { %2485 = vmatprep.subr.mxu1 %v2667_v0  ;;  %2496 = vmatprep.subr.mxu0 %v2667_v0 }
0x12ee   :  { %2486 = vmatpush3.msra.mxu1 %v2663_v18  ;;  %2497 = vmatpush3.msra.mxu0 %v25_v10  ;;  %v29_v18 = vld [vmem:[%s3282_s1 + $0x90] sm:$0xff] }
0x12ef   :  { %2487 = vmatprep.subr.mxu1 %v2667_v0  ;;  %2498 = vmatprep.subr.mxu0 %v2667_v0 }
0x12f0   :  { %2488 = vmatpush3.msra.mxu1 %v2664_v19  ;;  %2499 = vmatpush3.msra.mxu0 %v24_v11  ;;  %v28_v19 = vld [vmem:[%s3282_s1 + $0x88] sm:$0xff] }
0x12f1   :  { %2514 = vmatprep.subr.mxu1 %v2667_v0  ;;  %2503 = vmatprep.subr.mxu0 %v2667_v0 }
0x13a1   :  { %v1673_v22 = vpop.f32.mrf.mxu1 }
0x13a2   :  { %v1677_v47 = vadd.f32 %v1673_v22, %v178_v21 }
0x13a3   :  { %v2472_v23 = vpop.f32.mrf.mxu1 }
0x13a4   :  { %2629 = vtanh.f32 %v1677_v47  ;;  %v2095_v33 = vmul.f32 -1.442695, %v1677_v47 }
0x13a8   :  { %v1577_v24 = vpop.f32.mrf.mxu0 }
0x13a9   :  { %v1578_v26 = vadd.f32 %v2885_v51, %v1577_v24  ;;  %v33_v24 = vld [vmem:[%s3282_s1 + $0xb0] sm:$0xff] }
0x13aa   :  { %v2461_v27 = vpop.f32.mrf.mxu0 }
0x13ab   :  { %2631 = vtanh.f32 %v1578_v26  ;;  %v2093_v35 = vmul.f32 -1.442695, %v1578_v26  ;;  %v32_v26 = vld [vmem:[%s3282_s1 + $0xa8] sm:$0xff]  ;;  %v2100_v27 = vld [vmem:[%s3282_s1 + $0xbb] ss:$0 sm:$0xff] }
0x13ac   :  { %2633 = vpow2.f32 %v2095_v33 }
0x13ad   :  { %2635 = vpow2.f32 %v2093_v35 }
0x13b1   :  { %v2630_v29 = vpop.eup %2629 }
0x13b2   :  { %1687 = vrot.lane.b32.xlu1 %v2630_v29, %s2669_s25 }
0x13b8   :  { %v2632_v31 = vpop.eup %2631 }
0x13b9   :  { %1590 = vrot.lane.b32.xlu0 %v2632_v31, %s2669_s25  ;;  %v2634_v48 = vpop.eup %2633 }
0x13ba   :  { %v1681_v37 = vadd.f32 1.0, %v2634_v48  ;;  %v2636_v25 = vpop.eup %2635  ;;  %v2102_v48 = vld [vmem:[%s3282_s1 + $0xbc] ss:$0 sm:$0xff] }
0x13bb   :  { %v1584_v28 = vadd.f32 1.0, %v2636_v25 }
0x13bc   :  { %2637 = vrcp.f32 %v1681_v37 }
0x13bd   :  { %2639 = vrcp.f32 %v1584_v28 }
0x13c9   :  { %v2638_v30 = vpop.eup %2637 }
0x13ca   :  { %v2640_v34 = vpop.eup %2639  ;;  %v1685_v40 = vmul.f32 %v2638_v30, %v3150_v6 }
0x13cb   :  { %v1588_v43 = vmul.f32 %v2640_v34, %v3154_v61 }
0x1424   :  { %v1688_v51 = vpop.permute.xlu1 %1687 }
0x1425   :  { %v1690_v32 = vmul.f32 %v2638_v30, %v1688_v51 }
0x1427   :  { %1692 = vrot.lane.b32.xlu1 %v1690_v32, %s2670_s26 }
0x142b   :  { %v1591_v36 = vpop.permute.xlu0 %1590 }
0x142c   :  { %v1593_v44 = vmul.f32 %v2640_v34, %v1591_v36 }
0x142e   :  { %1595 = vrot.lane.b32.xlu0 %v1593_v44, %s2670_s26 }
0x1499   :  { %v1693_v41 = vpop.permute.xlu1 %1692 }
0x149a   :  { %v1695_v42 = vadd.f32 %v1693_v41, %v1685_v40 }
0x149c   :  { %2641 = vtanh.f32 %v1695_v42 }
0x14a0   :  { %v1596_v38 = vpop.permute.xlu0 %1595 }
0x14a1   :  { %v1598_v49 = vadd.f32 %v1596_v38, %v1588_v43 }
0x14a3   :  { %2643 = vtanh.f32 %v1598_v49 }
0x14a9   :  { %v2642_v39 = vpop.eup %2641 }
0x14aa   :  { %1698 = vrot.lane.b32.xlu1 %v2642_v39, %s2669_s25 }
0x14b0   :  { %v2644_v52 = vpop.eup %2643 }
0x14b1   :  { %1601 = vrot.lane.b32.xlu0 %v2644_v52, %s2669_s25 }
0x151c   :  { %v1699_v9 = vpop.permute.xlu1 %1698 }
0x151d   :  { %v1701_v50 = vmul.f32 %v2638_v30, %v1699_v9 }
0x151f   :  { %1703 = vrot.lane.b32.xlu0 %v1701_v50, %s2670_s26 }
0x1523   :  { %v1602_v53 = vpop.permute.xlu0 %1601 }
0x1524   :  { %v1604_v54 = vmul.f32 %v2640_v34, %v1602_v53 }
0x1526   :  { %1707 = vrot.lane.b32.xlu1 %v1604_v54, %s2669_s25 }
0x1591   :  { %v1704_v45 = vpop.permute.xlu0 %1703 }
0x1598   :  { %v1708_v55 = vpop.permute.xlu1 %1707 }
0x1599   :  { %v1710_v56 = vsel %vm181_vm2, %v1704_v45, %v1708_v55 }
0x159a   :  { %2490 = vmatmul.mubr.msk.f32.vlgmr.msra.gmra.mxu1 %vm289_vm3, %v1710_v56 }
0x159b   :  { %2518 = vmatprep.mubr.msk.f32.mxu1 %vm2668_vm1, %v2667_v0  ;;  %2515 = vmatpush3.msra.mxu1 %v33_v24 }
0x159c   :  { %2516 = vmatprep.subr.mxu1 %v2667_v0 }
0x159d   :  { %2517 = vmatpush3.msra.mxu1 %v32_v26 }
0x165a   :  { %v1780_v57 = vpop.f32.mrf.mxu1 }
0x165b   :  { %v1781_v59 = vadd.f32 %v2666_v58, %v1780_v57 }
0x165c   :  { %v2491_v2 = vpop.f32.mrf.mxu1 }
0x165d   :  { %2645 = vtanh.f32 %v1781_v59  ;;  %v2097_v6 = vmul.f32 -1.442695, %v1781_v59 }
0x165f   :  { %2647 = vpow2.f32 %v2097_v6 }
0x166a   :  { %v2646_v5 = vpop.eup %2645 }
0x166b   :  { %1793 = vrot.lane.b32.xlu0 %v2646_v5, %s2669_s25 }
0x166c   :  { %v2648_v60 = vpop.eup %2647 }
0x166d   :  { %v1787_v7 = vadd.f32 1.0, %v2648_v60 }
0x166f   :  { %2649 = vrcp.f32 %v1787_v7 }
0x167c   :  { %v2650_v61 = vpop.eup %2649 }
0x167d   :  { %v1791_v1 = vmul.f32 %v2650_v61, %v1598_v49 }
0x16dd   :  { %v1794_v62 = vpop.permute.xlu0 %1793 }
0x16de   :  { %v1796_v63 = vmul.f32 %v2650_v61, %v1794_v62 }
0x16e0   :  { %1798 = vrot.lane.b32.xlu1 %v1796_v63, %s2670_s26 }
0x1752   :  { %v1799_v3 = vpop.permute.xlu1 %1798 }
0x1753   :  { %v1801_v4 = vadd.f32 %v1799_v3, %v1791_v1 }
0x1755   :  { %2651 = vtanh.f32 %v1801_v4 }
0x1762   :  { %v2652_v12 = vpop.eup %2651 }
0x1763   :  { %1804 = vrot.lane.b32.xlu0 %v2652_v12, %s2669_s25 }
0x17d5   :  { %v1805_v13 = vpop.permute.xlu0 %1804 }
0x17d6   :  { %v1807_v14 = vmul.f32 %v2650_v61, %v1805_v13 }
0x17d8   :  { %1813 = vrot.lane.b32.xlu1 %v1807_v14, %s2670_s26 }
0x184a   :  { %v1814_v16 = vpop.permute.xlu1 %1813 }
0x184b   :  { %2501 = vmatmul.mubr.msk.f32.vlgmr.msra.gmra.mxu0 %vm181_vm2, %v1814_v16 }
0x184c   :  { %2504 = vmatpush3.msra.mxu0 %v31_v15  ;;  %2511 = vmatprep.mubr.msk.f32.mxu0 %vm2668_vm1, %v2667_v0 }
0x184d   :  { %2505 = vmatprep.subr.mxu0 %v2667_v0 }
0x184e   :  { %2506 = vmatpush3.msra.mxu0 %v30_v17 }
0x184f   :  { %2507 = vmatprep.subr.mxu0 %v2667_v0 }
0x1850   :  { %2508 = vmatpush3.msra.mxu0 %v29_v18 }
0x1851   :  { %2509 = vmatprep.subr.mxu0 %v2667_v0 }
0x1852   :  { %2510 = vmatpush3.msra.mxu0 %v28_v19 }
0x190b   :  { %v1883_v21 = vpop.f32.mrf.mxu0 }
0x190c   :  { %v1884_v22 = vadd.f32 %v2098_v20, %v1883_v21 }
0x190d   :  { %v2502_v47 = vpop.f32.mrf.mxu0 }
0x190e   :  { %v1887_v23 = vmax.f32 %v1884_v22, 0.0 }
0x1910   :  { %2512 = vmatmul.mubr.msk.f32.vlgmr.msra.gmra.mxu0 %vm181_vm2, %v1887_v23 }
0x19d0   :  { %v1961_v29 = vpop.f32.mrf.mxu0 }
0x19d1   :  { %v1962_v31 = vadd.f32 %v2100_v27, %v1961_v29 }
0x19d2   :  { %v2513_v33 = vpop.f32.mrf.mxu0 }
0x19d3   :  { %v1965_v35 = vmax.f32 %v1962_v31, 0.0 }
0x19d5   :  { %2519 = vmatmul.mubr.msk.f32.vlgmr.msra.gmra.mxu1 %vm1970_vm4, %v1965_v35 }
0x1a95   :  { %v2040_v0 = vpop.f32.mrf.mxu1 }
0x1a96   :  { %v2041_v37 = vadd.f32 %v2102_v48, %v2040_v0 }
0x1a97   :  { %v2520_v25 = vpop.f32.mrf.mxu1 }
0x1a98   :  { %2046 = vrot.lane.b32.xlu0 %v2041_v37, %s2670_s26 }
0x1b0a   :  { %v2047_v28 = vpop.permute.xlu0 %2046 }
0x1b0b   :  { %v2049_v30 = vsel %vm181_vm2, %v1814_v16, %v2047_v28 }
0x1b0c   :  { %v2051_v51 = vsel %vm2050_vm5, %v2049_v30, 0.0 }
0x1b0d   :  { %2052 = vst [vmem:[%s3284_s2] sm:$0xff] %v2051_v51 }

</bundles_post_ra>
